<compile_context>
chip_gen: v6e
topology: v6e:2x2x1
jax: 0.10.0
libtpu: 0.0.40
codegen_flags: <defaults>
</compile_context>

<pallas_src>
import math

import numpy as np

import jax
import jax.numpy as jnp
from jax.experimental import pallas as pl
from jax.experimental.pallas import tpu as pltpu

WIN = 11
SIGMA = 1.5
LANES = 128


def _gauss_weights():
    c = WIN // 2
    g = [math.exp(-((i - c) ** 2) / (2.0 * SIGMA ** 2)) for i in range(WIN)]
    s = sum(g)
    return [v / s for v in g]


_GW = _gauss_weights()  # 1D normalized Gaussian; 2D window = outer(g, g) (separable)


def _make_ssim_kernel(TH_IN, W, C1, C2):
    TH = TH_IN - WIN + 1      # output rows per tile
    Wo = W - WIN + 1          # VALID output columns

    def gauss_filter(x, scale=1.0):
        # Separable 11-tap Gaussian, VALID output (TH, Wo, LANES).
        # H pass first (major-dim slices, essentially free), then the sublane
        # (W) pass on the smaller intermediate.  `scale` is folded into the
        # W-pass weights at trace time (constant folded).
        acc = _GW[0] * x[0:TH]
        for k in range(1, WIN):
            acc = acc + _GW[k] * x[k:k + TH]
        out = (_GW[0] * scale) * acc[:, 0:Wo, :]
        for k in range(1, WIN):
            out = out + (_GW[k] * scale) * acc[:, k:k + Wo, :]
        return out

    def kernel(pred_ref, gt_ref, out_ref):
        p = pred_ref[...].astype(jnp.float32)   # (TH_IN, W, LANES)
        g = gt_ref[...].astype(jnp.float32)     # (TH_IN, W, LANES)

        mu1 = gauss_filter(p)
        mu2 = gauss_filter(g)
        mu1_sq = mu1 * mu1
        mu2_sq = mu2 * mu2
        mu1_mu2 = mu1 * mu2
        two_mu1_mu2 = mu1_mu2 + mu1_mu2

        sigma1_sq = gauss_filter(p * p) - mu1_sq
        sigma2_sq = gauss_filter(g * g) - mu2_sq
        two_sigma12 = gauss_filter(p * g, scale=2.0) - two_mu1_mu2

        num = (two_mu1_mu2 + C1) * (two_sigma12 + C2)
        den = (mu1_sq + mu2_sq + C1) * (sigma1_sq + sigma2_sq + C2)
        # den >= C1*C2 > 0, so the reciprocal is always well defined.
        ssim_map = num * pl.reciprocal(den, approx=False)   # (TH, Wo, LANES)

        # Per-output-row, per-lane partial sums (sublane reduce over Wo).  The
        # cross-lane reduce, row/lane masking and normalization happen outside.
        out_ref[...] = jnp.sum(ssim_map, axis=1)[None]       # (1, TH, LANES)

    return kernel


def _plan_tiles(H_out, W, n_imgs, in_itemsize):
    """Pick (TH output rows per tile, n_h tiles, vmem_limit_bytes)."""
    try:
        vmem_phys = int(pltpu.get_tpu_info().vmem_capacity_bytes)
    except Exception:
        vmem_phys = 64 * 1024 * 1024   # v7x-safe fallback (smallest generation)
    budget = int(vmem_phys * 0.50)     # conservative planning budget
    vmem_limit = int(vmem_phys * 0.85)  # generous scoped limit actually granted

    # Rough per-block VMEM model (bytes) for TH output rows (TH+10 input rows):
    #   ~3 f32 planes of TH_IN rows (p, g, product) + ~9 f32 planes of TH rows
    #   (filter acc + SSIM maps) + 2 tensors x 2 double-buffers of inputs.
    per_row = 128 * W * (48 + 4 * in_itemsize)
    fixed = 128 * W * (120 + 40 * in_itemsize)        # the 10 halo rows
    th_max = max(1, min(H_out, (budget - fixed) // per_row))

    # Minimum tiling to fit VMEM, then fill the 128-lane axis with extra
    # (image, h-tile) pairs as long as that does not add lane-blocks.
    n_h_min = -(-H_out // th_max)
    n_blocks_min = -(-(n_imgs * n_h_min) // LANES)
    n_h_des = min(H_out, max(n_h_min, (n_blocks_min * LANES) // n_imgs))
    th = -(-H_out // n_h_des)
    n_h = -(-H_out // th)
    return int(th), int(n_h), vmem_limit


def ssim_pallas(pred, gt, data_range=1.0):
    """Mean SSIM over the batch, matching SSIM().forward(pred, gt) with defaults."""
    assert pred.shape == gt.shape
    if pred.ndim == 3:  # mirrors the unsqueeze(0) in the PyTorch forward
        pred = pred[None]
        gt = gt[None]
    N, C, H, W = pred.shape
    assert H >= WIN and W >= WIN, "SSIM needs H, W >= 11 (VALID 11x11 window)"
    n_imgs = N * C
    H_out, Wo = H - WIN + 1, W - WIN + 1

    TH, n_h, vmem_limit = _plan_tiles(H_out, W, n_imgs, pred.dtype.itemsize)
    TH_IN = TH + WIN - 1

    n_lane = n_imgs * n_h
    n_blocks = -(-n_lane // LANES)
    n_lane_pad = n_blocks * LANES

    # Static overlapping H-window starts (last tile clamped in-bounds; its
    # duplicated leading rows are masked out of the final sum).
    starts = np.minimum(np.arange(n_h) * TH, H_out - TH)
    row_idx = starts[:, None] + np.arange(TH_IN)[None, :]     # (n_h, TH_IN)

    def relayout(x):
        # NCHW -> (image*tile, TH_IN, W) with halo rows duplicated per tile,
        # padded to a multiple of 128 lanes, image/tile index lane-minor.
        x = x.reshape(n_imgs, H, W)
        x = x[:, row_idx, :]                      # (n_imgs, n_h, TH_IN, W)
        x = x.reshape(n_lane, TH_IN, W)
        if n_lane_pad != n_lane:
            x = jnp.pad(x, ((0, n_lane_pad - n_lane), (0, 0), (0, 0)))
        return jnp.transpose(x, (1, 2, 0))        # (TH_IN, W, n_lane_pad)

    p = relayout(pred)
    g = relayout(gt)

    C1 = (0.01 * data_range) ** 2
    C2 = (0.03 * data_range) ** 2
    kernel = _make_ssim_kernel(TH_IN, W, C1, C2)

    per_row = pl.pallas_call(
        kernel,
        out_shape=jax.ShapeDtypeStruct((n_blocks, TH, LANES), jnp.float32),
        grid_spec=pltpu.PrefetchScalarGridSpec(
            num_scalar_prefetch=0,
            grid=(n_blocks,),
            in_specs=[
                pl.BlockSpec((TH_IN, W, LANES), lambda b: (0, 0, b)),
                pl.BlockSpec((TH_IN, W, LANES), lambda b: (0, 0, b)),
            ],
            out_specs=pl.BlockSpec((1, TH, LANES), lambda b: (b, 0, 0)),
        ),
        compiler_params=pltpu.CompilerParams(
            dimension_semantics=("parallel",),     # independent per-block outputs
            vmem_limit_bytes=vmem_limit,
        ),
    )(p, g)                                        # (n_blocks, TH, LANES)

    # Static mask: drop padded lanes and the duplicated rows of the clamped
    # last H-tile, then normalize by the number of real SSIM-map elements.
    valid_last = H_out - (n_h - 1) * TH            # in [1, TH]
    rows_valid = np.ones((n_h, TH), np.float32)
    rows_valid[n_h - 1, : TH - valid_last] = 0.0
    lane_valid = np.zeros((n_lane_pad, TH), np.float32)
    lane_valid[:n_lane] = np.tile(rows_valid, (n_imgs, 1))

    per_lane_row = per_row.transpose(0, 2, 1).reshape(n_lane_pad, TH)
    total = jnp.sum(per_lane_row * jnp.asarray(lane_valid))
    return total / float(n_imgs * H_out * Wo)


def _ssim_ref(pred, gt, data_range=1.0):
    """Pure-JAX reference (depthwise VALID 11x11 Gaussian conv)."""
    w1 = jnp.array(_GW, jnp.float32)
    win = jnp.outer(w1, w1).reshape(1, 1, WIN, WIN)
    N, C, H, W = pred.shape

    def filt(x):
        x4 = x.reshape(N * C, 1, H, W).astype(jnp.float32)
        y = jax.lax.conv_general_dilated(x4, win, (1, 1), "VALID")
        return y.reshape(N, C, H - WIN + 1, W - WIN + 1)

    C1 = (0.01 * data_range) ** 2
    C2 = (0.03 * data_range) ** 2
    p = pred.astype(jnp.float32)
    g = gt.astype(jnp.float32)
    mu1, mu2 = filt(p), filt(g)
    s1 = filt(p * p) - mu1 * mu1
    s2 = filt(g * g) - mu2 * mu2
    s12 = filt(p * g) - mu1 * mu2
    m = ((2 * mu1 * mu2 + C1) * (2 * s12 + C2)) / (
        (mu1 * mu1 + mu2 * mu2 + C1) * (s1 + s2 + C2))
    return m.mean()


if __name__ == "__main__":
    key = jax.random.PRNGKey(0)
    k1, k2 = jax.random.split(key)
    # Small NCHW inputs consistent with the module's image inputs.
    pred = jax.random.uniform(k1, (2, 4, 16, 16), dtype=jnp.float32)
    gt = jax.random.uniform(k2, (2, 4, 16, 16), dtype=jnp.float32)

    # TODO(synk): `valid` mask weighted-average branch, boundary_ignore cropping
    # and use_for_loss flag not exercised (module defaults reproduced exactly).

    out = ssim_pallas(pred, gt)
    out = jax.block_until_ready(out)

    ref = _ssim_ref(pred, gt)
    assert abs(float(out) - float(ref)) < 1e-4, (float(out), float(ref))

    print("KERNEL_OK")
</pallas_src>

<mosaic_0001>
module attributes {stable_mosaic.version = 11 : i64} {
  func.func @kernel(%arg0: i32, %arg1: memref<11x16x128xf32, #tpu.memory_space<vmem>>, %arg2: memref<11x16x128xf32, #tpu.memory_space<vmem>>, %arg3: memref<1x1x128xf32, #tpu.memory_space<vmem>>) attributes {dimension_semantics = [#tpu.dimension_semantics<parallel>], iteration_bounds = array<i64: 1>, scalar_prefetch = 0 : i64, scratch_operands = 0 : i64, tpu.core_type = #tpu.core_type<tc>, window_params = [{transform_indices = @transform_0, window_bounds = array<i64: 11, 16, 128>}, {transform_indices = @transform_1, window_bounds = array<i64: 11, 16, 128>}, {transform_indices = @transform_2, window_bounds = array<i64: 1, 1, 128>}]} {
    %c0 = arith.constant 0 : index
    %c0_0 = arith.constant 0 : index
    %c0_1 = arith.constant 0 : index
    %0 = vector.load %arg1[%c0, %c0_0, %c0_1] : memref<11x16x128xf32, #tpu.memory_space<vmem>>, vector<11x16x128xf32>
    %c0_2 = arith.constant 0 : index
    %c0_3 = arith.constant 0 : index
    %c0_4 = arith.constant 0 : index
    %1 = vector.load %arg2[%c0_2, %c0_3, %c0_4] : memref<11x16x128xf32, #tpu.memory_space<vmem>>, vector<11x16x128xf32>
    %2 = vector.extract_strided_slice %0 {offsets = [0, 0, 0], sizes = [1, 16, 128], strides = [1, 1, 1]} : vector<11x16x128xf32> to vector<1x16x128xf32>
    %cst = arith.constant 0.00102838012 : f32
    %3 = vector.broadcast %cst : f32 to vector<1x16x128xf32>
    %4 = arith.mulf %3, %2 : vector<1x16x128xf32>
    %5 = vector.extract_strided_slice %0 {offsets = [1, 0, 0], sizes = [1, 16, 128], strides = [1, 1, 1]} : vector<11x16x128xf32> to vector<1x16x128xf32>
    %cst_5 = arith.constant 0.00759875821 : f32
    %6 = vector.broadcast %cst_5 : f32 to vector<1x16x128xf32>
    %7 = arith.mulf %6, %5 : vector<1x16x128xf32>
    %8 = arith.addf %4, %7 : vector<1x16x128xf32>
    %9 = vector.extract_strided_slice %0 {offsets = [2, 0, 0], sizes = [1, 16, 128], strides = [1, 1, 1]} : vector<11x16x128xf32> to vector<1x16x128xf32>
    %cst_6 = arith.constant 0.0360007733 : f32
    %10 = vector.broadcast %cst_6 : f32 to vector<1x16x128xf32>
    %11 = arith.mulf %10, %9 : vector<1x16x128xf32>
    %12 = arith.addf %8, %11 : vector<1x16x128xf32>
    %13 = vector.extract_strided_slice %0 {offsets = [3, 0, 0], sizes = [1, 16, 128], strides = [1, 1, 1]} : vector<11x16x128xf32> to vector<1x16x128xf32>
    %cst_7 = arith.constant 0.109360687 : f32
    %14 = vector.broadcast %cst_7 : f32 to vector<1x16x128xf32>
    %15 = arith.mulf %14, %13 : vector<1x16x128xf32>
    %16 = arith.addf %12, %15 : vector<1x16x128xf32>
    %17 = vector.extract_strided_slice %0 {offsets = [4, 0, 0], sizes = [1, 16, 128], strides = [1, 1, 1]} : vector<11x16x128xf32> to vector<1x16x128xf32>
    %cst_8 = arith.constant 0.213005543 : f32
    %18 = vector.broadcast %cst_8 : f32 to vector<1x16x128xf32>
    %19 = arith.mulf %18, %17 : vector<1x16x128xf32>
    %20 = arith.addf %16, %19 : vector<1x16x128xf32>
    %21 = vector.extract_strided_slice %0 {offsets = [5, 0, 0], sizes = [1, 16, 128], strides = [1, 1, 1]} : vector<11x16x128xf32> to vector<1x16x128xf32>
    %cst_9 = arith.constant 0.266011715 : f32
    %22 = vector.broadcast %cst_9 : f32 to vector<1x16x128xf32>
    %23 = arith.mulf %22, %21 : vector<1x16x128xf32>
    %24 = arith.addf %20, %23 : vector<1x16x128xf32>
    %25 = vector.extract_strided_slice %0 {offsets = [6, 0, 0], sizes = [1, 16, 128], strides = [1, 1, 1]} : vector<11x16x128xf32> to vector<1x16x128xf32>
    %cst_10 = arith.constant 0.213005543 : f32
    %26 = vector.broadcast %cst_10 : f32 to vector<1x16x128xf32>
    %27 = arith.mulf %26, %25 : vector<1x16x128xf32>
    %28 = arith.addf %24, %27 : vector<1x16x128xf32>
    %29 = vector.extract_strided_slice %0 {offsets = [7, 0, 0], sizes = [1, 16, 128], strides = [1, 1, 1]} : vector<11x16x128xf32> to vector<1x16x128xf32>
    %cst_11 = arith.constant 0.109360687 : f32
    %30 = vector.broadcast %cst_11 : f32 to vector<1x16x128xf32>
    %31 = arith.mulf %30, %29 : vector<1x16x128xf32>
    %32 = arith.addf %28, %31 : vector<1x16x128xf32>
    %33 = vector.extract_strided_slice %0 {offsets = [8, 0, 0], sizes = [1, 16, 128], strides = [1, 1, 1]} : vector<11x16x128xf32> to vector<1x16x128xf32>
    %cst_12 = arith.constant 0.0360007733 : f32
    %34 = vector.broadcast %cst_12 : f32 to vector<1x16x128xf32>
    %35 = arith.mulf %34, %33 : vector<1x16x128xf32>
    %36 = arith.addf %32, %35 : vector<1x16x128xf32>
    %37 = vector.extract_strided_slice %0 {offsets = [9, 0, 0], sizes = [1, 16, 128], strides = [1, 1, 1]} : vector<11x16x128xf32> to vector<1x16x128xf32>
    %cst_13 = arith.constant 0.00759875821 : f32
    %38 = vector.broadcast %cst_13 : f32 to vector<1x16x128xf32>
    %39 = arith.mulf %38, %37 : vector<1x16x128xf32>
    %40 = arith.addf %36, %39 : vector<1x16x128xf32>
    %41 = vector.extract_strided_slice %0 {offsets = [10, 0, 0], sizes = [1, 16, 128], strides = [1, 1, 1]} : vector<11x16x128xf32> to vector<1x16x128xf32>
    %cst_14 = arith.constant 0.00102838012 : f32
    %42 = vector.broadcast %cst_14 : f32 to vector<1x16x128xf32>
    %43 = arith.mulf %42, %41 : vector<1x16x128xf32>
    %44 = arith.addf %40, %43 : vector<1x16x128xf32>
    %45 = vector.extract_strided_slice %44 {offsets = [0, 0, 0], sizes = [1, 6, 128], strides = [1, 1, 1]} : vector<1x16x128xf32> to vector<1x6x128xf32>
    %cst_15 = arith.constant 0.00102838012 : f32
    %46 = vector.broadcast %cst_15 : f32 to vector<1x6x128xf32>
    %47 = arith.mulf %46, %45 : vector<1x6x128xf32>
    %48 = vector.extract_strided_slice %44 {offsets = [0, 1, 0], sizes = [1, 6, 128], strides = [1, 1, 1]} : vector<1x16x128xf32> to vector<1x6x128xf32>
    %cst_16 = arith.constant 0.00759875821 : f32
    %49 = vector.broadcast %cst_16 : f32 to vector<1x6x128xf32>
    %50 = arith.mulf %49, %48 : vector<1x6x128xf32>
    %51 = arith.addf %47, %50 : vector<1x6x128xf32>
    %52 = vector.extract_strided_slice %44 {offsets = [0, 2, 0], sizes = [1, 6, 128], strides = [1, 1, 1]} : vector<1x16x128xf32> to vector<1x6x128xf32>
    %cst_17 = arith.constant 0.0360007733 : f32
    %53 = vector.broadcast %cst_17 : f32 to vector<1x6x128xf32>
    %54 = arith.mulf %53, %52 : vector<1x6x128xf32>
    %55 = arith.addf %51, %54 : vector<1x6x128xf32>
    %56 = vector.extract_strided_slice %44 {offsets = [0, 3, 0], sizes = [1, 6, 128], strides = [1, 1, 1]} : vector<1x16x128xf32> to vector<1x6x128xf32>
    %cst_18 = arith.constant 0.109360687 : f32
    %57 = vector.broadcast %cst_18 : f32 to vector<1x6x128xf32>
    %58 = arith.mulf %57, %56 : vector<1x6x128xf32>
    %59 = arith.addf %55, %58 : vector<1x6x128xf32>
    %60 = vector.extract_strided_slice %44 {offsets = [0, 4, 0], sizes = [1, 6, 128], strides = [1, 1, 1]} : vector<1x16x128xf32> to vector<1x6x128xf32>
    %cst_19 = arith.constant 0.213005543 : f32
    %61 = vector.broadcast %cst_19 : f32 to vector<1x6x128xf32>
    %62 = arith.mulf %61, %60 : vector<1x6x128xf32>
    %63 = arith.addf %59, %62 : vector<1x6x128xf32>
    %64 = vector.extract_strided_slice %44 {offsets = [0, 5, 0], sizes = [1, 6, 128], strides = [1, 1, 1]} : vector<1x16x128xf32> to vector<1x6x128xf32>
    %cst_20 = arith.constant 0.266011715 : f32
    %65 = vector.broadcast %cst_20 : f32 to vector<1x6x128xf32>
    %66 = arith.mulf %65, %64 : vector<1x6x128xf32>
    %67 = arith.addf %63, %66 : vector<1x6x128xf32>
    %68 = vector.extract_strided_slice %44 {offsets = [0, 6, 0], sizes = [1, 6, 128], strides = [1, 1, 1]} : vector<1x16x128xf32> to vector<1x6x128xf32>
    %cst_21 = arith.constant 0.213005543 : f32
    %69 = vector.broadcast %cst_21 : f32 to vector<1x6x128xf32>
    %70 = arith.mulf %69, %68 : vector<1x6x128xf32>
    %71 = arith.addf %67, %70 : vector<1x6x128xf32>
    %72 = vector.extract_strided_slice %44 {offsets = [0, 7, 0], sizes = [1, 6, 128], strides = [1, 1, 1]} : vector<1x16x128xf32> to vector<1x6x128xf32>
    %cst_22 = arith.constant 0.109360687 : f32
    %73 = vector.broadcast %cst_22 : f32 to vector<1x6x128xf32>
    %74 = arith.mulf %73, %72 : vector<1x6x128xf32>
    %75 = arith.addf %71, %74 : vector<1x6x128xf32>
    %76 = vector.extract_strided_slice %44 {offsets = [0, 8, 0], sizes = [1, 6, 128], strides = [1, 1, 1]} : vector<1x16x128xf32> to vector<1x6x128xf32>
    %cst_23 = arith.constant 0.0360007733 : f32
    %77 = vector.broadcast %cst_23 : f32 to vector<1x6x128xf32>
    %78 = arith.mulf %77, %76 : vector<1x6x128xf32>
    %79 = arith.addf %75, %78 : vector<1x6x128xf32>
    %80 = vector.extract_strided_slice %44 {offsets = [0, 9, 0], sizes = [1, 6, 128], strides = [1, 1, 1]} : vector<1x16x128xf32> to vector<1x6x128xf32>
    %cst_24 = arith.constant 0.00759875821 : f32
    %81 = vector.broadcast %cst_24 : f32 to vector<1x6x128xf32>
    %82 = arith.mulf %81, %80 : vector<1x6x128xf32>
    %83 = arith.addf %79, %82 : vector<1x6x128xf32>
    %84 = vector.extract_strided_slice %44 {offsets = [0, 10, 0], sizes = [1, 6, 128], strides = [1, 1, 1]} : vector<1x16x128xf32> to vector<1x6x128xf32>
    %cst_25 = arith.constant 0.00102838012 : f32
    %85 = vector.broadcast %cst_25 : f32 to vector<1x6x128xf32>
    %86 = arith.mulf %85, %84 : vector<1x6x128xf32>
    %87 = arith.addf %83, %86 : vector<1x6x128xf32>
    %88 = vector.extract_strided_slice %1 {offsets = [0, 0, 0], sizes = [1, 16, 128], strides = [1, 1, 1]} : vector<11x16x128xf32> to vector<1x16x128xf32>
    %cst_26 = arith.constant 0.00102838012 : f32
    %89 = vector.broadcast %cst_26 : f32 to vector<1x16x128xf32>
    %90 = arith.mulf %89, %88 : vector<1x16x128xf32>
    %91 = vector.extract_strided_slice %1 {offsets = [1, 0, 0], sizes = [1, 16, 128], strides = [1, 1, 1]} : vector<11x16x128xf32> to vector<1x16x128xf32>
    %cst_27 = arith.constant 0.00759875821 : f32
    %92 = vector.broadcast %cst_27 : f32 to vector<1x16x128xf32>
    %93 = arith.mulf %92, %91 : vector<1x16x128xf32>
    %94 = arith.addf %90, %93 : vector<1x16x128xf32>
    %95 = vector.extract_strided_slice %1 {offsets = [2, 0, 0], sizes = [1, 16, 128], strides = [1, 1, 1]} : vector<11x16x128xf32> to vector<1x16x128xf32>
    %cst_28 = arith.constant 0.0360007733 : f32
    %96 = vector.broadcast %cst_28 : f32 to vector<1x16x128xf32>
    %97 = arith.mulf %96, %95 : vector<1x16x128xf32>
    %98 = arith.addf %94, %97 : vector<1x16x128xf32>
    %99 = vector.extract_strided_slice %1 {offsets = [3, 0, 0], sizes = [1, 16, 128], strides = [1, 1, 1]} : vector<11x16x128xf32> to vector<1x16x128xf32>
    %cst_29 = arith.constant 0.109360687 : f32
    %100 = vector.broadcast %cst_29 : f32 to vector<1x16x128xf32>
    %101 = arith.mulf %100, %99 : vector<1x16x128xf32>
    %102 = arith.addf %98, %101 : vector<1x16x128xf32>
    %103 = vector.extract_strided_slice %1 {offsets = [4, 0, 0], sizes = [1, 16, 128], strides = [1, 1, 1]} : vector<11x16x128xf32> to vector<1x16x128xf32>
    %cst_30 = arith.constant 0.213005543 : f32
    %104 = vector.broadcast %cst_30 : f32 to vector<1x16x128xf32>
    %105 = arith.mulf %104, %103 : vector<1x16x128xf32>
    %106 = arith.addf %102, %105 : vector<1x16x128xf32>
    %107 = vector.extract_strided_slice %1 {offsets = [5, 0, 0], sizes = [1, 16, 128], strides = [1, 1, 1]} : vector<11x16x128xf32> to vector<1x16x128xf32>
    %cst_31 = arith.constant 0.266011715 : f32
    %108 = vector.broadcast %cst_31 : f32 to vector<1x16x128xf32>
    %109 = arith.mulf %108, %107 : vector<1x16x128xf32>
    %110 = arith.addf %106, %109 : vector<1x16x128xf32>
    %111 = vector.extract_strided_slice %1 {offsets = [6, 0, 0], sizes = [1, 16, 128], strides = [1, 1, 1]} : vector<11x16x128xf32> to vector<1x16x128xf32>
    %cst_32 = arith.constant 0.213005543 : f32
    %112 = vector.broadcast %cst_32 : f32 to vector<1x16x128xf32>
    %113 = arith.mulf %112, %111 : vector<1x16x128xf32>
    %114 = arith.addf %110, %113 : vector<1x16x128xf32>
    %115 = vector.extract_strided_slice %1 {offsets = [7, 0, 0], sizes = [1, 16, 128], strides = [1, 1, 1]} : vector<11x16x128xf32> to vector<1x16x128xf32>
    %cst_33 = arith.constant 0.109360687 : f32
    %116 = vector.broadcast %cst_33 : f32 to vector<1x16x128xf32>
    %117 = arith.mulf %116, %115 : vector<1x16x128xf32>
    %118 = arith.addf %114, %117 : vector<1x16x128xf32>
    %119 = vector.extract_strided_slice %1 {offsets = [8, 0, 0], sizes = [1, 16, 128], strides = [1, 1, 1]} : vector<11x16x128xf32> to vector<1x16x128xf32>
    %cst_34 = arith.constant 0.0360007733 : f32
    %120 = vector.broadcast %cst_34 : f32 to vector<1x16x128xf32>
    %121 = arith.mulf %120, %119 : vector<1x16x128xf32>
    %122 = arith.addf %118, %121 : vector<1x16x128xf32>
    %123 = vector.extract_strided_slice %1 {offsets = [9, 0, 0], sizes = [1, 16, 128], strides = [1, 1, 1]} : vector<11x16x128xf32> to vector<1x16x128xf32>
    %cst_35 = arith.constant 0.00759875821 : f32
    %124 = vector.broadcast %cst_35 : f32 to vector<1x16x128xf32>
    %125 = arith.mulf %124, %123 : vector<1x16x128xf32>
    %126 = arith.addf %122, %125 : vector<1x16x128xf32>
    %127 = vector.extract_strided_slice %1 {offsets = [10, 0, 0], sizes = [1, 16, 128], strides = [1, 1, 1]} : vector<11x16x128xf32> to vector<1x16x128xf32>
    %cst_36 = arith.constant 0.00102838012 : f32
    %128 = vector.broadcast %cst_36 : f32 to vector<1x16x128xf32>
    %129 = arith.mulf %128, %127 : vector<1x16x128xf32>
    %130 = arith.addf %126, %129 : vector<1x16x128xf32>
    %131 = vector.extract_strided_slice %130 {offsets = [0, 0, 0], sizes = [1, 6, 128], strides = [1, 1, 1]} : vector<1x16x128xf32> to vector<1x6x128xf32>
    %cst_37 = arith.constant 0.00102838012 : f32
    %132 = vector.broadcast %cst_37 : f32 to vector<1x6x128xf32>
    %133 = arith.mulf %132, %131 : vector<1x6x128xf32>
    %134 = vector.extract_strided_slice %130 {offsets = [0, 1, 0], sizes = [1, 6, 128], strides = [1, 1, 1]} : vector<1x16x128xf32> to vector<1x6x128xf32>
    %cst_38 = arith.constant 0.00759875821 : f32
    %135 = vector.broadcast %cst_38 : f32 to vector<1x6x128xf32>
    %136 = arith.mulf %135, %134 : vector<1x6x128xf32>
    %137 = arith.addf %133, %136 : vector<1x6x128xf32>
    %138 = vector.extract_strided_slice %130 {offsets = [0, 2, 0], sizes = [1, 6, 128], strides = [1, 1, 1]} : vector<1x16x128xf32> to vector<1x6x128xf32>
    %cst_39 = arith.constant 0.0360007733 : f32
    %139 = vector.broadcast %cst_39 : f32 to vector<1x6x128xf32>
    %140 = arith.mulf %139, %138 : vector<1x6x128xf32>
    %141 = arith.addf %137, %140 : vector<1x6x128xf32>
    %142 = vector.extract_strided_slice %130 {offsets = [0, 3, 0], sizes = [1, 6, 128], strides = [1, 1, 1]} : vector<1x16x128xf32> to vector<1x6x128xf32>
    %cst_40 = arith.constant 0.109360687 : f32
    %143 = vector.broadcast %cst_40 : f32 to vector<1x6x128xf32>
    %144 = arith.mulf %143, %142 : vector<1x6x128xf32>
    %145 = arith.addf %141, %144 : vector<1x6x128xf32>
    %146 = vector.extract_strided_slice %130 {offsets = [0, 4, 0], sizes = [1, 6, 128], strides = [1, 1, 1]} : vector<1x16x128xf32> to vector<1x6x128xf32>
    %cst_41 = arith.constant 0.213005543 : f32
    %147 = vector.broadcast %cst_41 : f32 to vector<1x6x128xf32>
    %148 = arith.mulf %147, %146 : vector<1x6x128xf32>
    %149 = arith.addf %145, %148 : vector<1x6x128xf32>
    %150 = vector.extract_strided_slice %130 {offsets = [0, 5, 0], sizes = [1, 6, 128], strides = [1, 1, 1]} : vector<1x16x128xf32> to vector<1x6x128xf32>
    %cst_42 = arith.constant 0.266011715 : f32
    %151 = vector.broadcast %cst_42 : f32 to vector<1x6x128xf32>
    %152 = arith.mulf %151, %150 : vector<1x6x128xf32>
    %153 = arith.addf %149, %152 : vector<1x6x128xf32>
    %154 = vector.extract_strided_slice %130 {offsets = [0, 6, 0], sizes = [1, 6, 128], strides = [1, 1, 1]} : vector<1x16x128xf32> to vector<1x6x128xf32>
    %cst_43 = arith.constant 0.213005543 : f32
    %155 = vector.broadcast %cst_43 : f32 to vector<1x6x128xf32>
    %156 = arith.mulf %155, %154 : vector<1x6x128xf32>
    %157 = arith.addf %153, %156 : vector<1x6x128xf32>
    %158 = vector.extract_strided_slice %130 {offsets = [0, 7, 0], sizes = [1, 6, 128], strides = [1, 1, 1]} : vector<1x16x128xf32> to vector<1x6x128xf32>
    %cst_44 = arith.constant 0.109360687 : f32
    %159 = vector.broadcast %cst_44 : f32 to vector<1x6x128xf32>
    %160 = arith.mulf %159, %158 : vector<1x6x128xf32>
    %161 = arith.addf %157, %160 : vector<1x6x128xf32>
    %162 = vector.extract_strided_slice %130 {offsets = [0, 8, 0], sizes = [1, 6, 128], strides = [1, 1, 1]} : vector<1x16x128xf32> to vector<1x6x128xf32>
    %cst_45 = arith.constant 0.0360007733 : f32
    %163 = vector.broadcast %cst_45 : f32 to vector<1x6x128xf32>
    %164 = arith.mulf %163, %162 : vector<1x6x128xf32>
    %165 = arith.addf %161, %164 : vector<1x6x128xf32>
    %166 = vector.extract_strided_slice %130 {offsets = [0, 9, 0], sizes = [1, 6, 128], strides = [1, 1, 1]} : vector<1x16x128xf32> to vector<1x6x128xf32>
    %cst_46 = arith.constant 0.00759875821 : f32
    %167 = vector.broadcast %cst_46 : f32 to vector<1x6x128xf32>
    %168 = arith.mulf %167, %166 : vector<1x6x128xf32>
    %169 = arith.addf %165, %168 : vector<1x6x128xf32>
    %170 = vector.extract_strided_slice %130 {offsets = [0, 10, 0], sizes = [1, 6, 128], strides = [1, 1, 1]} : vector<1x16x128xf32> to vector<1x6x128xf32>
    %cst_47 = arith.constant 0.00102838012 : f32
    %171 = vector.broadcast %cst_47 : f32 to vector<1x6x128xf32>
    %172 = arith.mulf %171, %170 : vector<1x6x128xf32>
    %173 = arith.addf %169, %172 : vector<1x6x128xf32>
    %174 = arith.mulf %87, %87 : vector<1x6x128xf32>
    %175 = arith.mulf %173, %173 : vector<1x6x128xf32>
    %176 = arith.mulf %87, %173 : vector<1x6x128xf32>
    %177 = arith.addf %176, %176 : vector<1x6x128xf32>
    %178 = arith.mulf %0, %0 : vector<11x16x128xf32>
    %179 = vector.extract_strided_slice %178 {offsets = [0, 0, 0], sizes = [1, 16, 128], strides = [1, 1, 1]} : vector<11x16x128xf32> to vector<1x16x128xf32>
    %cst_48 = arith.constant 0.00102838012 : f32
    %180 = vector.broadcast %cst_48 : f32 to vector<1x16x128xf32>
    %181 = arith.mulf %180, %179 : vector<1x16x128xf32>
    %182 = vector.extract_strided_slice %178 {offsets = [1, 0, 0], sizes = [1, 16, 128], strides = [1, 1, 1]} : vector<11x16x128xf32> to vector<1x16x128xf32>
    %cst_49 = arith.constant 0.00759875821 : f32
    %183 = vector.broadcast %cst_49 : f32 to vector<1x16x128xf32>
    %184 = arith.mulf %183, %182 : vector<1x16x128xf32>
    %185 = arith.addf %181, %184 : vector<1x16x128xf32>
    %186 = vector.extract_strided_slice %178 {offsets = [2, 0, 0], sizes = [1, 16, 128], strides = [1, 1, 1]} : vector<11x16x128xf32> to vector<1x16x128xf32>
    %cst_50 = arith.constant 0.0360007733 : f32
    %187 = vector.broadcast %cst_50 : f32 to vector<1x16x128xf32>
    %188 = arith.mulf %187, %186 : vector<1x16x128xf32>
    %189 = arith.addf %185, %188 : vector<1x16x128xf32>
    %190 = vector.extract_strided_slice %178 {offsets = [3, 0, 0], sizes = [1, 16, 128], strides = [1, 1, 1]} : vector<11x16x128xf32> to vector<1x16x128xf32>
    %cst_51 = arith.constant 0.109360687 : f32
    %191 = vector.broadcast %cst_51 : f32 to vector<1x16x128xf32>
    %192 = arith.mulf %191, %190 : vector<1x16x128xf32>
    %193 = arith.addf %189, %192 : vector<1x16x128xf32>
    %194 = vector.extract_strided_slice %178 {offsets = [4, 0, 0], sizes = [1, 16, 128], strides = [1, 1, 1]} : vector<11x16x128xf32> to vector<1x16x128xf32>
    %cst_52 = arith.constant 0.213005543 : f32
    %195 = vector.broadcast %cst_52 : f32 to vector<1x16x128xf32>
    %196 = arith.mulf %195, %194 : vector<1x16x128xf32>
    %197 = arith.addf %193, %196 : vector<1x16x128xf32>
    %198 = vector.extract_strided_slice %178 {offsets = [5, 0, 0], sizes = [1, 16, 128], strides = [1, 1, 1]} : vector<11x16x128xf32> to vector<1x16x128xf32>
    %cst_53 = arith.constant 0.266011715 : f32
    %199 = vector.broadcast %cst_53 : f32 to vector<1x16x128xf32>
    %200 = arith.mulf %199, %198 : vector<1x16x128xf32>
    %201 = arith.addf %197, %200 : vector<1x16x128xf32>
    %202 = vector.extract_strided_slice %178 {offsets = [6, 0, 0], sizes = [1, 16, 128], strides = [1, 1, 1]} : vector<11x16x128xf32> to vector<1x16x128xf32>
    %cst_54 = arith.constant 0.213005543 : f32
    %203 = vector.broadcast %cst_54 : f32 to vector<1x16x128xf32>
    %204 = arith.mulf %203, %202 : vector<1x16x128xf32>
    %205 = arith.addf %201, %204 : vector<1x16x128xf32>
    %206 = vector.extract_strided_slice %178 {offsets = [7, 0, 0], sizes = [1, 16, 128], strides = [1, 1, 1]} : vector<11x16x128xf32> to vector<1x16x128xf32>
    %cst_55 = arith.constant 0.109360687 : f32
    %207 = vector.broadcast %cst_55 : f32 to vector<1x16x128xf32>
    %208 = arith.mulf %207, %206 : vector<1x16x128xf32>
    %209 = arith.addf %205, %208 : vector<1x16x128xf32>
    %210 = vector.extract_strided_slice %178 {offsets = [8, 0, 0], sizes = [1, 16, 128], strides = [1, 1, 1]} : vector<11x16x128xf32> to vector<1x16x128xf32>
    %cst_56 = arith.constant 0.0360007733 : f32
    %211 = vector.broadcast %cst_56 : f32 to vector<1x16x128xf32>
    %212 = arith.mulf %211, %210 : vector<1x16x128xf32>
    %213 = arith.addf %209, %212 : vector<1x16x128xf32>
    %214 = vector.extract_strided_slice %178 {offsets = [9, 0, 0], sizes = [1, 16, 128], strides = [1, 1, 1]} : vector<11x16x128xf32> to vector<1x16x128xf32>
    %cst_57 = arith.constant 0.00759875821 : f32
    %215 = vector.broadcast %cst_57 : f32 to vector<1x16x128xf32>
    %216 = arith.mulf %215, %214 : vector<1x16x128xf32>
    %217 = arith.addf %213, %216 : vector<1x16x128xf32>
    %218 = vector.extract_strided_slice %178 {offsets = [10, 0, 0], sizes = [1, 16, 128], strides = [1, 1, 1]} : vector<11x16x128xf32> to vector<1x16x128xf32>
    %cst_58 = arith.constant 0.00102838012 : f32
    %219 = vector.broadcast %cst_58 : f32 to vector<1x16x128xf32>
    %220 = arith.mulf %219, %218 : vector<1x16x128xf32>
    %221 = arith.addf %217, %220 : vector<1x16x128xf32>
    %222 = vector.extract_strided_slice %221 {offsets = [0, 0, 0], sizes = [1, 6, 128], strides = [1, 1, 1]} : vector<1x16x128xf32> to vector<1x6x128xf32>
    %cst_59 = arith.constant 0.00102838012 : f32
    %223 = vector.broadcast %cst_59 : f32 to vector<1x6x128xf32>
    %224 = arith.mulf %223, %222 : vector<1x6x128xf32>
    %225 = vector.extract_strided_slice %221 {offsets = [0, 1, 0], sizes = [1, 6, 128], strides = [1, 1, 1]} : vector<1x16x128xf32> to vector<1x6x128xf32>
    %cst_60 = arith.constant 0.00759875821 : f32
    %226 = vector.broadcast %cst_60 : f32 to vector<1x6x128xf32>
    %227 = arith.mulf %226, %225 : vector<1x6x128xf32>
    %228 = arith.addf %224, %227 : vector<1x6x128xf32>
    %229 = vector.extract_strided_slice %221 {offsets = [0, 2, 0], sizes = [1, 6, 128], strides = [1, 1, 1]} : vector<1x16x128xf32> to vector<1x6x128xf32>
    %cst_61 = arith.constant 0.0360007733 : f32
    %230 = vector.broadcast %cst_61 : f32 to vector<1x6x128xf32>
    %231 = arith.mulf %230, %229 : vector<1x6x128xf32>
    %232 = arith.addf %228, %231 : vector<1x6x128xf32>
    %233 = vector.extract_strided_slice %221 {offsets = [0, 3, 0], sizes = [1, 6, 128], strides = [1, 1, 1]} : vector<1x16x128xf32> to vector<1x6x128xf32>
    %cst_62 = arith.constant 0.109360687 : f32
    %234 = vector.broadcast %cst_62 : f32 to vector<1x6x128xf32>
    %235 = arith.mulf %234, %233 : vector<1x6x128xf32>
    %236 = arith.addf %232, %235 : vector<1x6x128xf32>
    %237 = vector.extract_strided_slice %221 {offsets = [0, 4, 0], sizes = [1, 6, 128], strides = [1, 1, 1]} : vector<1x16x128xf32> to vector<1x6x128xf32>
    %cst_63 = arith.constant 0.213005543 : f32
    %238 = vector.broadcast %cst_63 : f32 to vector<1x6x128xf32>
    %239 = arith.mulf %238, %237 : vector<1x6x128xf32>
    %240 = arith.addf %236, %239 : vector<1x6x128xf32>
    %241 = vector.extract_strided_slice %221 {offsets = [0, 5, 0], sizes = [1, 6, 128], strides = [1, 1, 1]} : vector<1x16x128xf32> to vector<1x6x128xf32>
    %cst_64 = arith.constant 0.266011715 : f32
    %242 = vector.broadcast %cst_64 : f32 to vector<1x6x128xf32>
    %243 = arith.mulf %242, %241 : vector<1x6x128xf32>
    %244 = arith.addf %240, %243 : vector<1x6x128xf32>
    %245 = vector.extract_strided_slice %221 {offsets = [0, 6, 0], sizes = [1, 6, 128], strides = [1, 1, 1]} : vector<1x16x128xf32> to vector<1x6x128xf32>
    %cst_65 = arith.constant 0.213005543 : f32
    %246 = vector.broadcast %cst_65 : f32 to vector<1x6x128xf32>
    %247 = arith.mulf %246, %245 : vector<1x6x128xf32>
    %248 = arith.addf %244, %247 : vector<1x6x128xf32>
    %249 = vector.extract_strided_slice %221 {offsets = [0, 7, 0], sizes = [1, 6, 128], strides = [1, 1, 1]} : vector<1x16x128xf32> to vector<1x6x128xf32>
    %cst_66 = arith.constant 0.109360687 : f32
    %250 = vector.broadcast %cst_66 : f32 to vector<1x6x128xf32>
    %251 = arith.mulf %250, %249 : vector<1x6x128xf32>
    %252 = arith.addf %248, %251 : vector<1x6x128xf32>
    %253 = vector.extract_strided_slice %221 {offsets = [0, 8, 0], sizes = [1, 6, 128], strides = [1, 1, 1]} : vector<1x16x128xf32> to vector<1x6x128xf32>
    %cst_67 = arith.constant 0.0360007733 : f32
    %254 = vector.broadcast %cst_67 : f32 to vector<1x6x128xf32>
    %255 = arith.mulf %254, %253 : vector<1x6x128xf32>
    %256 = arith.addf %252, %255 : vector<1x6x128xf32>
    %257 = vector.extract_strided_slice %221 {offsets = [0, 9, 0], sizes = [1, 6, 128], strides = [1, 1, 1]} : vector<1x16x128xf32> to vector<1x6x128xf32>
    %cst_68 = arith.constant 0.00759875821 : f32
    %258 = vector.broadcast %cst_68 : f32 to vector<1x6x128xf32>
    %259 = arith.mulf %258, %257 : vector<1x6x128xf32>
    %260 = arith.addf %256, %259 : vector<1x6x128xf32>
    %261 = vector.extract_strided_slice %221 {offsets = [0, 10, 0], sizes = [1, 6, 128], strides = [1, 1, 1]} : vector<1x16x128xf32> to vector<1x6x128xf32>
    %cst_69 = arith.constant 0.00102838012 : f32
    %262 = vector.broadcast %cst_69 : f32 to vector<1x6x128xf32>
    %263 = arith.mulf %262, %261 : vector<1x6x128xf32>
    %264 = arith.addf %260, %263 : vector<1x6x128xf32>
    %265 = arith.subf %264, %174 : vector<1x6x128xf32>
    %266 = arith.mulf %1, %1 : vector<11x16x128xf32>
    %267 = vector.extract_strided_slice %266 {offsets = [0, 0, 0], sizes = [1, 16, 128], strides = [1, 1, 1]} : vector<11x16x128xf32> to vector<1x16x128xf32>
    %cst_70 = arith.constant 0.00102838012 : f32
    %268 = vector.broadcast %cst_70 : f32 to vector<1x16x128xf32>
    %269 = arith.mulf %268, %267 : vector<1x16x128xf32>
    %270 = vector.extract_strided_slice %266 {offsets = [1, 0, 0], sizes = [1, 16, 128], strides = [1, 1, 1]} : vector<11x16x128xf32> to vector<1x16x128xf32>
    %cst_71 = arith.constant 0.00759875821 : f32
    %271 = vector.broadcast %cst_71 : f32 to vector<1x16x128xf32>
    %272 = arith.mulf %271, %270 : vector<1x16x128xf32>
    %273 = arith.addf %269, %272 : vector<1x16x128xf32>
    %274 = vector.extract_strided_slice %266 {offsets = [2, 0, 0], sizes = [1, 16, 128], strides = [1, 1, 1]} : vector<11x16x128xf32> to vector<1x16x128xf32>
    %cst_72 = arith.constant 0.0360007733 : f32
    %275 = vector.broadcast %cst_72 : f32 to vector<1x16x128xf32>
    %276 = arith.mulf %275, %274 : vector<1x16x128xf32>
    %277 = arith.addf %273, %276 : vector<1x16x128xf32>
    %278 = vector.extract_strided_slice %266 {offsets = [3, 0, 0], sizes = [1, 16, 128], strides = [1, 1, 1]} : vector<11x16x128xf32> to vector<1x16x128xf32>
    %cst_73 = arith.constant 0.109360687 : f32
    %279 = vector.broadcast %cst_73 : f32 to vector<1x16x128xf32>
    %280 = arith.mulf %279, %278 : vector<1x16x128xf32>
    %281 = arith.addf %277, %280 : vector<1x16x128xf32>
    %282 = vector.extract_strided_slice %266 {offsets = [4, 0, 0], sizes = [1, 16, 128], strides = [1, 1, 1]} : vector<11x16x128xf32> to vector<1x16x128xf32>
    %cst_74 = arith.constant 0.213005543 : f32
    %283 = vector.broadcast %cst_74 : f32 to vector<1x16x128xf32>
    %284 = arith.mulf %283, %282 : vector<1x16x128xf32>
    %285 = arith.addf %281, %284 : vector<1x16x128xf32>
    %286 = vector.extract_strided_slice %266 {offsets = [5, 0, 0], sizes = [1, 16, 128], strides = [1, 1, 1]} : vector<11x16x128xf32> to vector<1x16x128xf32>
    %cst_75 = arith.constant 0.266011715 : f32
    %287 = vector.broadcast %cst_75 : f32 to vector<1x16x128xf32>
    %288 = arith.mulf %287, %286 : vector<1x16x128xf32>
    %289 = arith.addf %285, %288 : vector<1x16x128xf32>
    %290 = vector.extract_strided_slice %266 {offsets = [6, 0, 0], sizes = [1, 16, 128], strides = [1, 1, 1]} : vector<11x16x128xf32> to vector<1x16x128xf32>
    %cst_76 = arith.constant 0.213005543 : f32
    %291 = vector.broadcast %cst_76 : f32 to vector<1x16x128xf32>
    %292 = arith.mulf %291, %290 : vector<1x16x128xf32>
    %293 = arith.addf %289, %292 : vector<1x16x128xf32>
    %294 = vector.extract_strided_slice %266 {offsets = [7, 0, 0], sizes = [1, 16, 128], strides = [1, 1, 1]} : vector<11x16x128xf32> to vector<1x16x128xf32>
    %cst_77 = arith.constant 0.109360687 : f32
    %295 = vector.broadcast %cst_77 : f32 to vector<1x16x128xf32>
    %296 = arith.mulf %295, %294 : vector<1x16x128xf32>
    %297 = arith.addf %293, %296 : vector<1x16x128xf32>
    %298 = vector.extract_strided_slice %266 {offsets = [8, 0, 0], sizes = [1, 16, 128], strides = [1, 1, 1]} : vector<11x16x128xf32> to vector<1x16x128xf32>
    %cst_78 = arith.constant 0.0360007733 : f32
    %299 = vector.broadcast %cst_78 : f32 to vector<1x16x128xf32>
    %300 = arith.mulf %299, %298 : vector<1x16x128xf32>
    %301 = arith.addf %297, %300 : vector<1x16x128xf32>
    %302 = vector.extract_strided_slice %266 {offsets = [9, 0, 0], sizes = [1, 16, 128], strides = [1, 1, 1]} : vector<11x16x128xf32> to vector<1x16x128xf32>
    %cst_79 = arith.constant 0.00759875821 : f32
    %303 = vector.broadcast %cst_79 : f32 to vector<1x16x128xf32>
    %304 = arith.mulf %303, %302 : vector<1x16x128xf32>
    %305 = arith.addf %301, %304 : vector<1x16x128xf32>
    %306 = vector.extract_strided_slice %266 {offsets = [10, 0, 0], sizes = [1, 16, 128], strides = [1, 1, 1]} : vector<11x16x128xf32> to vector<1x16x128xf32>
    %cst_80 = arith.constant 0.00102838012 : f32
    %307 = vector.broadcast %cst_80 : f32 to vector<1x16x128xf32>
    %308 = arith.mulf %307, %306 : vector<1x16x128xf32>
    %309 = arith.addf %305, %308 : vector<1x16x128xf32>
    %310 = vector.extract_strided_slice %309 {offsets = [0, 0, 0], sizes = [1, 6, 128], strides = [1, 1, 1]} : vector<1x16x128xf32> to vector<1x6x128xf32>
    %cst_81 = arith.constant 0.00102838012 : f32
    %311 = vector.broadcast %cst_81 : f32 to vector<1x6x128xf32>
    %312 = arith.mulf %311, %310 : vector<1x6x128xf32>
    %313 = vector.extract_strided_slice %309 {offsets = [0, 1, 0], sizes = [1, 6, 128], strides = [1, 1, 1]} : vector<1x16x128xf32> to vector<1x6x128xf32>
    %cst_82 = arith.constant 0.00759875821 : f32
    %314 = vector.broadcast %cst_82 : f32 to vector<1x6x128xf32>
    %315 = arith.mulf %314, %313 : vector<1x6x128xf32>
    %316 = arith.addf %312, %315 : vector<1x6x128xf32>
    %317 = vector.extract_strided_slice %309 {offsets = [0, 2, 0], sizes = [1, 6, 128], strides = [1, 1, 1]} : vector<1x16x128xf32> to vector<1x6x128xf32>
    %cst_83 = arith.constant 0.0360007733 : f32
    %318 = vector.broadcast %cst_83 : f32 to vector<1x6x128xf32>
    %319 = arith.mulf %318, %317 : vector<1x6x128xf32>
    %320 = arith.addf %316, %319 : vector<1x6x128xf32>
    %321 = vector.extract_strided_slice %309 {offsets = [0, 3, 0], sizes = [1, 6, 128], strides = [1, 1, 1]} : vector<1x16x128xf32> to vector<1x6x128xf32>
    %cst_84 = arith.constant 0.109360687 : f32
    %322 = vector.broadcast %cst_84 : f32 to vector<1x6x128xf32>
    %323 = arith.mulf %322, %321 : vector<1x6x128xf32>
    %324 = arith.addf %320, %323 : vector<1x6x128xf32>
    %325 = vector.extract_strided_slice %309 {offsets = [0, 4, 0], sizes = [1, 6, 128], strides = [1, 1, 1]} : vector<1x16x128xf32> to vector<1x6x128xf32>
    %cst_85 = arith.constant 0.213005543 : f32
    %326 = vector.broadcast %cst_85 : f32 to vector<1x6x128xf32>
    %327 = arith.mulf %326, %325 : vector<1x6x128xf32>
    %328 = arith.addf %324, %327 : vector<1x6x128xf32>
    %329 = vector.extract_strided_slice %309 {offsets = [0, 5, 0], sizes = [1, 6, 128], strides = [1, 1, 1]} : vector<1x16x128xf32> to vector<1x6x128xf32>
    %cst_86 = arith.constant 0.266011715 : f32
    %330 = vector.broadcast %cst_86 : f32 to vector<1x6x128xf32>
    %331 = arith.mulf %330, %329 : vector<1x6x128xf32>
    %332 = arith.addf %328, %331 : vector<1x6x128xf32>
    %333 = vector.extract_strided_slice %309 {offsets = [0, 6, 0], sizes = [1, 6, 128], strides = [1, 1, 1]} : vector<1x16x128xf32> to vector<1x6x128xf32>
    %cst_87 = arith.constant 0.213005543 : f32
    %334 = vector.broadcast %cst_87 : f32 to vector<1x6x128xf32>
    %335 = arith.mulf %334, %333 : vector<1x6x128xf32>
    %336 = arith.addf %332, %335 : vector<1x6x128xf32>
    %337 = vector.extract_strided_slice %309 {offsets = [0, 7, 0], sizes = [1, 6, 128], strides = [1, 1, 1]} : vector<1x16x128xf32> to vector<1x6x128xf32>
    %cst_88 = arith.constant 0.109360687 : f32
    %338 = vector.broadcast %cst_88 : f32 to vector<1x6x128xf32>
    %339 = arith.mulf %338, %337 : vector<1x6x128xf32>
    %340 = arith.addf %336, %339 : vector<1x6x128xf32>
    %341 = vector.extract_strided_slice %309 {offsets = [0, 8, 0], sizes = [1, 6, 128], strides = [1, 1, 1]} : vector<1x16x128xf32> to vector<1x6x128xf32>
    %cst_89 = arith.constant 0.0360007733 : f32
    %342 = vector.broadcast %cst_89 : f32 to vector<1x6x128xf32>
    %343 = arith.mulf %342, %341 : vector<1x6x128xf32>
    %344 = arith.addf %340, %343 : vector<1x6x128xf32>
    %345 = vector.extract_strided_slice %309 {offsets = [0, 9, 0], sizes = [1, 6, 128], strides = [1, 1, 1]} : vector<1x16x128xf32> to vector<1x6x128xf32>
    %cst_90 = arith.constant 0.00759875821 : f32
    %346 = vector.broadcast %cst_90 : f32 to vector<1x6x128xf32>
    %347 = arith.mulf %346, %345 : vector<1x6x128xf32>
    %348 = arith.addf %344, %347 : vector<1x6x128xf32>
    %349 = vector.extract_strided_slice %309 {offsets = [0, 10, 0], sizes = [1, 6, 128], strides = [1, 1, 1]} : vector<1x16x128xf32> to vector<1x6x128xf32>
    %cst_91 = arith.constant 0.00102838012 : f32
    %350 = vector.broadcast %cst_91 : f32 to vector<1x6x128xf32>
    %351 = arith.mulf %350, %349 : vector<1x6x128xf32>
    %352 = arith.addf %348, %351 : vector<1x6x128xf32>
    %353 = arith.subf %352, %175 : vector<1x6x128xf32>
    %354 = arith.mulf %0, %1 : vector<11x16x128xf32>
    %355 = vector.extract_strided_slice %354 {offsets = [0, 0, 0], sizes = [1, 16, 128], strides = [1, 1, 1]} : vector<11x16x128xf32> to vector<1x16x128xf32>
    %cst_92 = arith.constant 0.00102838012 : f32
    %356 = vector.broadcast %cst_92 : f32 to vector<1x16x128xf32>
    %357 = arith.mulf %356, %355 : vector<1x16x128xf32>
    %358 = vector.extract_strided_slice %354 {offsets = [1, 0, 0], sizes = [1, 16, 128], strides = [1, 1, 1]} : vector<11x16x128xf32> to vector<1x16x128xf32>
    %cst_93 = arith.constant 0.00759875821 : f32
    %359 = vector.broadcast %cst_93 : f32 to vector<1x16x128xf32>
    %360 = arith.mulf %359, %358 : vector<1x16x128xf32>
    %361 = arith.addf %357, %360 : vector<1x16x128xf32>
    %362 = vector.extract_strided_slice %354 {offsets = [2, 0, 0], sizes = [1, 16, 128], strides = [1, 1, 1]} : vector<11x16x128xf32> to vector<1x16x128xf32>
    %cst_94 = arith.constant 0.0360007733 : f32
    %363 = vector.broadcast %cst_94 : f32 to vector<1x16x128xf32>
    %364 = arith.mulf %363, %362 : vector<1x16x128xf32>
    %365 = arith.addf %361, %364 : vector<1x16x128xf32>
    %366 = vector.extract_strided_slice %354 {offsets = [3, 0, 0], sizes = [1, 16, 128], strides = [1, 1, 1]} : vector<11x16x128xf32> to vector<1x16x128xf32>
    %cst_95 = arith.constant 0.109360687 : f32
    %367 = vector.broadcast %cst_95 : f32 to vector<1x16x128xf32>
    %368 = arith.mulf %367, %366 : vector<1x16x128xf32>
    %369 = arith.addf %365, %368 : vector<1x16x128xf32>
    %370 = vector.extract_strided_slice %354 {offsets = [4, 0, 0], sizes = [1, 16, 128], strides = [1, 1, 1]} : vector<11x16x128xf32> to vector<1x16x128xf32>
    %cst_96 = arith.constant 0.213005543 : f32
    %371 = vector.broadcast %cst_96 : f32 to vector<1x16x128xf32>
    %372 = arith.mulf %371, %370 : vector<1x16x128xf32>
    %373 = arith.addf %369, %372 : vector<1x16x128xf32>
    %374 = vector.extract_strided_slice %354 {offsets = [5, 0, 0], sizes = [1, 16, 128], strides = [1, 1, 1]} : vector<11x16x128xf32> to vector<1x16x128xf32>
    %cst_97 = arith.constant 0.266011715 : f32
    %375 = vector.broadcast %cst_97 : f32 to vector<1x16x128xf32>
    %376 = arith.mulf %375, %374 : vector<1x16x128xf32>
    %377 = arith.addf %373, %376 : vector<1x16x128xf32>
    %378 = vector.extract_strided_slice %354 {offsets = [6, 0, 0], sizes = [1, 16, 128], strides = [1, 1, 1]} : vector<11x16x128xf32> to vector<1x16x128xf32>
    %cst_98 = arith.constant 0.213005543 : f32
    %379 = vector.broadcast %cst_98 : f32 to vector<1x16x128xf32>
    %380 = arith.mulf %379, %378 : vector<1x16x128xf32>
    %381 = arith.addf %377, %380 : vector<1x16x128xf32>
    %382 = vector.extract_strided_slice %354 {offsets = [7, 0, 0], sizes = [1, 16, 128], strides = [1, 1, 1]} : vector<11x16x128xf32> to vector<1x16x128xf32>
    %cst_99 = arith.constant 0.109360687 : f32
    %383 = vector.broadcast %cst_99 : f32 to vector<1x16x128xf32>
    %384 = arith.mulf %383, %382 : vector<1x16x128xf32>
    %385 = arith.addf %381, %384 : vector<1x16x128xf32>
    %386 = vector.extract_strided_slice %354 {offsets = [8, 0, 0], sizes = [1, 16, 128], strides = [1, 1, 1]} : vector<11x16x128xf32> to vector<1x16x128xf32>
    %cst_100 = arith.constant 0.0360007733 : f32
    %387 = vector.broadcast %cst_100 : f32 to vector<1x16x128xf32>
    %388 = arith.mulf %387, %386 : vector<1x16x128xf32>
    %389 = arith.addf %385, %388 : vector<1x16x128xf32>
    %390 = vector.extract_strided_slice %354 {offsets = [9, 0, 0], sizes = [1, 16, 128], strides = [1, 1, 1]} : vector<11x16x128xf32> to vector<1x16x128xf32>
    %cst_101 = arith.constant 0.00759875821 : f32
    %391 = vector.broadcast %cst_101 : f32 to vector<1x16x128xf32>
    %392 = arith.mulf %391, %390 : vector<1x16x128xf32>
    %393 = arith.addf %389, %392 : vector<1x16x128xf32>
    %394 = vector.extract_strided_slice %354 {offsets = [10, 0, 0], sizes = [1, 16, 128], strides = [1, 1, 1]} : vector<11x16x128xf32> to vector<1x16x128xf32>
    %cst_102 = arith.constant 0.00102838012 : f32
    %395 = vector.broadcast %cst_102 : f32 to vector<1x16x128xf32>
    %396 = arith.mulf %395, %394 : vector<1x16x128xf32>
    %397 = arith.addf %393, %396 : vector<1x16x128xf32>
    %398 = vector.extract_strided_slice %397 {offsets = [0, 0, 0], sizes = [1, 6, 128], strides = [1, 1, 1]} : vector<1x16x128xf32> to vector<1x6x128xf32>
    %cst_103 = arith.constant 0.00205676025 : f32
    %399 = vector.broadcast %cst_103 : f32 to vector<1x6x128xf32>
    %400 = arith.mulf %399, %398 : vector<1x6x128xf32>
    %401 = vector.extract_strided_slice %397 {offsets = [0, 1, 0], sizes = [1, 6, 128], strides = [1, 1, 1]} : vector<1x16x128xf32> to vector<1x6x128xf32>
    %cst_104 = arith.constant 0.0151975164 : f32
    %402 = vector.broadcast %cst_104 : f32 to vector<1x6x128xf32>
    %403 = arith.mulf %402, %401 : vector<1x6x128xf32>
    %404 = arith.addf %400, %403 : vector<1x6x128xf32>
    %405 = vector.extract_strided_slice %397 {offsets = [0, 2, 0], sizes = [1, 6, 128], strides = [1, 1, 1]} : vector<1x16x128xf32> to vector<1x6x128xf32>
    %cst_105 = arith.constant 0.0720015466 : f32
    %406 = vector.broadcast %cst_105 : f32 to vector<1x6x128xf32>
    %407 = arith.mulf %406, %405 : vector<1x6x128xf32>
    %408 = arith.addf %404, %407 : vector<1x6x128xf32>
    %409 = vector.extract_strided_slice %397 {offsets = [0, 3, 0], sizes = [1, 6, 128], strides = [1, 1, 1]} : vector<1x16x128xf32> to vector<1x6x128xf32>
    %cst_106 = arith.constant 0.218721375 : f32
    %410 = vector.broadcast %cst_106 : f32 to vector<1x6x128xf32>
    %411 = arith.mulf %410, %409 : vector<1x6x128xf32>
    %412 = arith.addf %408, %411 : vector<1x6x128xf32>
    %413 = vector.extract_strided_slice %397 {offsets = [0, 4, 0], sizes = [1, 6, 128], strides = [1, 1, 1]} : vector<1x16x128xf32> to vector<1x6x128xf32>
    %cst_107 = arith.constant 0.426011086 : f32
    %414 = vector.broadcast %cst_107 : f32 to vector<1x6x128xf32>
    %415 = arith.mulf %414, %413 : vector<1x6x128xf32>
    %416 = arith.addf %412, %415 : vector<1x6x128xf32>
    %417 = vector.extract_strided_slice %397 {offsets = [0, 5, 0], sizes = [1, 6, 128], strides = [1, 1, 1]} : vector<1x16x128xf32> to vector<1x6x128xf32>
    %cst_108 = arith.constant 0.53202343 : f32
    %418 = vector.broadcast %cst_108 : f32 to vector<1x6x128xf32>
    %419 = arith.mulf %418, %417 : vector<1x6x128xf32>
    %420 = arith.addf %416, %419 : vector<1x6x128xf32>
    %421 = vector.extract_strided_slice %397 {offsets = [0, 6, 0], sizes = [1, 6, 128], strides = [1, 1, 1]} : vector<1x16x128xf32> to vector<1x6x128xf32>
    %cst_109 = arith.constant 0.426011086 : f32
    %422 = vector.broadcast %cst_109 : f32 to vector<1x6x128xf32>
    %423 = arith.mulf %422, %421 : vector<1x6x128xf32>
    %424 = arith.addf %420, %423 : vector<1x6x128xf32>
    %425 = vector.extract_strided_slice %397 {offsets = [0, 7, 0], sizes = [1, 6, 128], strides = [1, 1, 1]} : vector<1x16x128xf32> to vector<1x6x128xf32>
    %cst_110 = arith.constant 0.218721375 : f32
    %426 = vector.broadcast %cst_110 : f32 to vector<1x6x128xf32>
    %427 = arith.mulf %426, %425 : vector<1x6x128xf32>
    %428 = arith.addf %424, %427 : vector<1x6x128xf32>
    %429 = vector.extract_strided_slice %397 {offsets = [0, 8, 0], sizes = [1, 6, 128], strides = [1, 1, 1]} : vector<1x16x128xf32> to vector<1x6x128xf32>
    %cst_111 = arith.constant 0.0720015466 : f32
    %430 = vector.broadcast %cst_111 : f32 to vector<1x6x128xf32>
    %431 = arith.mulf %430, %429 : vector<1x6x128xf32>
    %432 = arith.addf %428, %431 : vector<1x6x128xf32>
    %433 = vector.extract_strided_slice %397 {offsets = [0, 9, 0], sizes = [1, 6, 128], strides = [1, 1, 1]} : vector<1x16x128xf32> to vector<1x6x128xf32>
    %cst_112 = arith.constant 0.0151975164 : f32
    %434 = vector.broadcast %cst_112 : f32 to vector<1x6x128xf32>
    %435 = arith.mulf %434, %433 : vector<1x6x128xf32>
    %436 = arith.addf %432, %435 : vector<1x6x128xf32>
    %437 = vector.extract_strided_slice %397 {offsets = [0, 10, 0], sizes = [1, 6, 128], strides = [1, 1, 1]} : vector<1x16x128xf32> to vector<1x6x128xf32>
    %cst_113 = arith.constant 0.00205676025 : f32
    %438 = vector.broadcast %cst_113 : f32 to vector<1x6x128xf32>
    %439 = arith.mulf %438, %437 : vector<1x6x128xf32>
    %440 = arith.addf %436, %439 : vector<1x6x128xf32>
    %441 = arith.subf %440, %177 : vector<1x6x128xf32>
    %cst_114 = arith.constant 9.99999974E-5 : f32
    %442 = vector.broadcast %cst_114 : f32 to vector<1x6x128xf32>
    %443 = arith.addf %177, %442 : vector<1x6x128xf32>
    %cst_115 = arith.constant 8.99999984E-4 : f32
    %444 = vector.broadcast %cst_115 : f32 to vector<1x6x128xf32>
    %445 = arith.addf %441, %444 : vector<1x6x128xf32>
    %446 = arith.mulf %443, %445 : vector<1x6x128xf32>
    %447 = arith.addf %174, %175 : vector<1x6x128xf32>
    %cst_116 = arith.constant 9.99999974E-5 : f32
    %448 = vector.broadcast %cst_116 : f32 to vector<1x6x128xf32>
    %449 = arith.addf %447, %448 : vector<1x6x128xf32>
    %450 = arith.addf %265, %353 : vector<1x6x128xf32>
    %cst_117 = arith.constant 8.99999984E-4 : f32
    %451 = vector.broadcast %cst_117 : f32 to vector<1x6x128xf32>
    %452 = arith.addf %450, %451 : vector<1x6x128xf32>
    %453 = arith.mulf %449, %452 : vector<1x6x128xf32>
    %454 = tpu.reciprocal %453 : vector<1x6x128xf32> -> vector<1x6x128xf32>
    %455 = arith.mulf %446, %454 : vector<1x6x128xf32>
    %cst_118 = arith.constant dense<0.000000e+00> : vector<1x128xf32>
    %456 = vector.multi_reduction <add>, %455, %cst_118 [1] : vector<1x6x128xf32> to vector<1x128xf32>
    %457 = vector.shape_cast %456 : vector<1x128xf32> to vector<1x1x128xf32>
    %c0_119 = arith.constant 0 : index
    %c0_120 = arith.constant 0 : index
    %c0_121 = arith.constant 0 : index
    %458 = vector.load %arg3[%c0_119, %c0_120, %c0_121] : memref<1x1x128xf32, #tpu.memory_space<vmem>>, vector<1x1x128xf32>
    tpu.vector_store %arg3[%c0_119, %c0_120, %c0_121], %457 {strides = array<i32>} : memref<1x1x128xf32, #tpu.memory_space<vmem>>, vector<1x1x128xf32>,
    return
  }
  func.func @transform_0(%arg0: i32) -> (i32, i32, i32) {
    %c0_i32 = arith.constant 0 : i32
    %c0_i32_0 = arith.constant 0 : i32
    %c0_i32_1 = arith.constant 0 : i32
    return %c0_i32, %c0_i32_0, %arg0 : i32, i32, i32
  }
  func.func @transform_1(%arg0: i32) -> (i32, i32, i32) {
    %c0_i32 = arith.constant 0 : i32
    %c0_i32_0 = arith.constant 0 : i32
    %c0_i32_1 = arith.constant 0 : i32
    return %c0_i32, %c0_i32_0, %arg0 : i32, i32, i32
  }
  func.func @transform_2(%arg0: i32) -> (i32, i32, i32) {
    %c0_i32 = arith.constant 0 : i32
    %c0_i32_0 = arith.constant 0 : i32
    %c0_i32_1 = arith.constant 0 : i32
    return %arg0, %c0_i32, %c0_i32_0 : i32, i32, i32
  }
}

</mosaic_0001>

<bundles_post_ra>
// kernel: tpu_custom_call.1
= control target key start
LH: loop header
LB: loop body
LE: loop exit
PB: predicated region body
PF: predicated region fallthrough
CT: control target
= control target key end

     0   :  { %7 = vsyncpa [#allocation3], 0  ;;  %s1306_s0 = inlined_call_operand.hbm [shape: f32[11,16,128], index: 0, kind: input, shape index: {}]   ;;  %s1307_s1 = inlined_call_operand.hbm [shape: f32[11,16,128], index: 1, kind: input, shape index: {}]   ;;  %s1308_s2 = inlined_call_operand.hbm [shape: f32[1,1,128], index: 2, kind: output, shape index: {}]  }
   0x1   :  { %8 = vsyncpa [#allocation6], 0 }
   0x2   :  { %9 = vsyncpa [#allocation4], 0  ;;  %s780_s9 = smov [#allocation2]  }
   0x3   :  { %s15_s10 = sshll.u32 %s780_s9, 4  ;;  %s16_s10 = int_to_ptr.vmem [resolvable:$true] %s15_s10 }
   0x4   :  { %s722_s11 = scalar_lea.vmem %s16_s10, 2816  ;;  %p727_p1 = scmp.lt.s32.totalorder %s16_s10, %s16_s10 }
   0x5   :  { %p723_p0 = scmp.ne.s32.totalorder %s16_s10, %s722_s11  ;;  %p728_p2 = scmp.lt.s32.totalorder %s722_s11, %s722_s11 }
   0x7   :  { %p729_p3 = por %p728_p2, %p727_p1 }
   0x9   :  { %p730_p4 = pnand %p729_p3, %p723_p0 }
   0xb   :  { %733 = shalt.err (!%p730_p4)
}
   0xc   :  { %s781_s12 = smov 128   ;;  %s782_s13 = smov 8  }
   0xd   :  { %21 = dma.hbm_to_vmem [thread:$0]  %s1306_s0, 2816, %s16_s10, [#allocation3], %s781_s12, %s781_s12, %s782_s13  }
   0xe   :  { %s783_s16 = smov [#allocation5]  }
   0xf   :  { %s27_s17 = sshll.u32 %s783_s16, 4  ;;  %s28_s17 = int_to_ptr.vmem [resolvable:$true] %s27_s17 }
  0x10   :  { %s742_s18 = scalar_lea.vmem %s28_s17, 2816  ;;  %p747_p6 = scmp.lt.s32.totalorder %s28_s17, %s28_s17 }
  0x11   :  { %p743_p5 = scmp.ne.s32.totalorder %s28_s17, %s742_s18  ;;  %p748_p7 = scmp.lt.s32.totalorder %s742_s18, %s742_s18 }
  0x13   :  { %p749_p8 = por %p748_p7, %p747_p6 }
  0x15   :  { %p750_p9 = pnand %p749_p8, %p743_p5 }
  0x17   :  { %753 = shalt.err (!%p750_p9)
}
  0x18   :  { %33 = dma.hbm_to_vmem [thread:$0]  %s1307_s1, 2816, %s28_s17, [#allocation6], %s781_s12, %s781_s12, %s782_s13  }
  0x19   :  { %774 = dma.done.wait [#allocation3], 2816  }
  0x1a   :  { %775 = vsyncadd [#allocation3], 4294964480 }
  0x1b   :  { %776 = dma.done.wait [#allocation6], 2816  }
  0x1c   :  { %777 = vsyncadd [#allocation6], 4294964480  ;;  %v806_v0 = vld [vmem:[#allocation2] sm:$0xff]  ;;  %v808_v1 = vld [vmem:[#allocation2 + $0x8] sm:$0xff]  ;;  %vm141_vm0 = vcmask 1044480   ;;  %vm151_vm1 = vcmask 1043456  }
  0x1d   :  { %1346 = vst [vmem:[#allocation11_spill] sm:$0xff] %v806_v0  ;;  %1347 = vst [vmem:[#allocation12_spill] sm:$0xff] %v808_v1  ;;  %v810_v2 = vld [vmem:[#allocation2 + $0x10] sm:$0xff]  ;;  %v812_v3 = vld [vmem:[#allocation2 + $0x18] sm:$0xff]  ;;  %v84_v4 = vmul.f32 0.0010283801, %v806_v0  ;;  %v841_v26 = vmul.f32 %v806_v0, %v806_v0  ;;  %v845_v27 = vmul.f32 %v808_v1, %v808_v1 }
  0x1e   :  { %1348 = vst [vmem:[#allocation13_spill] sm:$0xff] %v810_v2  ;;  %1349 = vst [vmem:[#allocation14_spill] sm:$0xff] %v812_v3  ;;  %v815_v5 = vld [vmem:[#allocation2 + $0x20] sm:$0xff]  ;;  %v85_v6 = vmul.f32 0.0010283801, %v808_v1  ;;  %v818_v7 = vld [vmem:[#allocation2 + $0x28] sm:$0xff]  ;;  %v852_v31 = vmul.f32 %v810_v2, %v810_v2  ;;  %v856_v32 = vmul.f32 %v812_v3, %v812_v3 }
  0x1f   :  { %1350 = vst [vmem:[#allocation15_spill] sm:$0xff] %v815_v5  ;;  %1351 = vst [vmem:[#allocation16_spill] sm:$0xff] %v818_v7  ;;  %v86_v8 = vmul.f32 0.007598758, %v810_v2  ;;  %v821_v9 = vld [vmem:[#allocation2 + $0x30] sm:$0xff]  ;;  %v824_v11 = vld [vmem:[#allocation2 + $0x38] sm:$0xff]  ;;  %v865_v37 = vmul.f32 %v815_v5, %v815_v5  ;;  %v869_v38 = vmul.f32 %v818_v7, %v818_v7 }
  0x20   :  { %1352 = vst [vmem:[#allocation17_spill] sm:$0xff] %v821_v9  ;;  %v87_v10 = vmul.f32 0.007598758, %v812_v3  ;;  %1353 = vst [vmem:[#allocation18_spill] sm:$0xff] %v824_v11  ;;  %v90_v13 = vmul.f32 0.036000773, %v815_v5  ;;  %v880_v44 = vmul.f32 %v821_v9, %v821_v9  ;;  %v884_v45 = vmul.f32 %v824_v11, %v824_v11 }
  0x21   :  { %v88_v12 = vadd.f32 %v86_v8, %v84_v4  ;;  %v827_v14 = vld [vmem:[#allocation2 + $0x40] sm:$0xff]  ;;  %v91_v16 = vmul.f32 0.036000773, %v818_v7  ;;  %v830_v17 = vld [vmem:[#allocation2 + $0x48] sm:$0xff]  ;;  %v94_v19 = vmul.f32 0.10936069, %v821_v9 }
  0x22   :  { %1354 = vst [vmem:[#allocation19_spill] sm:$0xff] %v827_v14  ;;  %v89_v15 = vadd.f32 %v87_v10, %v85_v6  ;;  %1355 = vst [vmem:[#allocation20_spill] sm:$0xff] %v830_v17  ;;  %v833_v20 = vld [vmem:[#allocation2 + $0x50] sm:$0xff]  ;;  %v95_v22 = vmul.f32 0.10936069, %v824_v11  ;;  %v836_v23 = vld [vmem:[#allocation2 + $0x58] sm:$0xff]  ;;  %v895_v51 = vmul.f32 %v827_v14, %v827_v14  ;;  %v899_v52 = vmul.f32 %v830_v17, %v830_v17 }
  0x23   :  { %v92_v18 = vadd.f32 %v90_v13, %v88_v12  ;;  %1356 = vst [vmem:[#allocation21_spill] sm:$0xff] %v833_v20  ;;  %1357 = vst [vmem:[#allocation22_spill] sm:$0xff] %v836_v23  ;;  %v98_v25 = vmul.f32 0.21300554, %v827_v14  ;;  %v847_v28 = vld [vmem:[#allocation2 + $0x60] sm:$0xff]  ;;  %v858_v33 = vld [vmem:[#allocation2 + $0x68] sm:$0xff]  ;;  %v913_v60 = vmul.f32 %v833_v20, %v833_v20  ;;  %v923_v8 = vmul.f32 %v836_v23, %v836_v23 }
  0x24   :  { %v93_v21 = vadd.f32 %v91_v16, %v89_v15  ;;  %1358 = vst [vmem:[#allocation23_spill] sm:$0xff] %v847_v28  ;;  %v99_v30 = vmul.f32 0.21300554, %v830_v17  ;;  %1359 = vst [vmem:[#allocation24_spill] sm:$0xff] %v858_v33  ;;  %v860_v34 = vld [vmem:[#allocation2 + $0x70] sm:$0xff]  ;;  %v871_v39 = vld [vmem:[#allocation2 + $0x78] sm:$0xff] }
  0x25   :  { %v96_v24 = vadd.f32 %v94_v19, %v92_v18  ;;  %1360 = vst [vmem:[#allocation25_spill] sm:$0xff] %v860_v34  ;;  %v102_v36 = vmul.f32 0.26601171, %v833_v20  ;;  %1361 = vst [vmem:[#allocation26_spill] sm:$0xff] %v871_v39  ;;  %v873_v40 = vld [vmem:[#allocation2 + $0x80] sm:$0xff]  ;;  %v875_v41 = vld [vmem:[#allocation2 + $0x88] sm:$0xff]  ;;  %v933_v18 = vmul.f32 %v847_v28, %v847_v28 }
  0x26   :  { %v97_v29 = vadd.f32 %v95_v22, %v93_v21  ;;  %1362 = vst [vmem:[#allocation27_spill] sm:$0xff] %v873_v40  ;;  %1363 = vst [vmem:[#allocation28_spill] sm:$0xff] %v875_v41  ;;  %v103_v43 = vmul.f32 0.26601171, %v836_v23  ;;  %v886_v46 = vld [vmem:[#allocation2 + $0x90] sm:$0xff]  ;;  %v888_v47 = vld [vmem:[#allocation2 + $0x98] sm:$0xff] }
  0x27   :  { %v100_v35 = vadd.f32 %v98_v25, %v96_v24  ;;  %1364 = vst [vmem:[#allocation29_spill] sm:$0xff] %v886_v46  ;;  %1365 = vst [vmem:[#allocation30_spill] sm:$0xff] %v888_v47  ;;  %v890_v48 = vld [vmem:[#allocation5] sm:$0xff]  ;;  %v106_v50 = vmul.f32 0.21300554, %v847_v28  ;;  %v901_v53 = vld [vmem:[#allocation2 + $0xa0] sm:$0xff] }
  0x28   :  { %v101_v42 = vadd.f32 %v99_v30, %v97_v29  ;;  %1366 = vst [vmem:[#allocation31_spill] sm:$0xff] %v890_v48  ;;  %1367 = vst [vmem:[#allocation32_spill] sm:$0xff] %v901_v53  ;;  %v903_v54 = vld [vmem:[#allocation2 + $0xa8] sm:$0xff]  ;;  %v905_v55 = vld [vmem:[#allocation5 + $0x8] sm:$0xff]  ;;  %v107_v58 = vmul.f32 0.21300554, %v858_v33 }
  0x29   :  { %v104_v49 = vadd.f32 %v102_v36, %v100_v35  ;;  %1368 = vst [vmem:[#allocation33_spill] sm:$0xff] %v903_v54  ;;  %1369 = vst [vmem:[#allocation34_spill] sm:$0xff] %v905_v55  ;;  %v907_v56 = vld [vmem:[#allocation5 + $0x10] sm:$0xff]  ;;  %v110_v59 = vmul.f32 0.10936069, %v860_v34  ;;  %v915_v61 = vld [vmem:[#allocation5 + $0x18] sm:$0xff] }
  0x2a   :  { %1370 = vst [vmem:[#allocation35_spill] sm:$0xff] %v907_v56  ;;  %v105_v57 = vadd.f32 %v103_v43, %v101_v42  ;;  %1371 = vst [vmem:[#allocation36_spill] sm:$0xff] %v915_v61  ;;  %v917_v62 = vld [vmem:[#allocation5 + $0x20] sm:$0xff]  ;;  %v111_v4 = vmul.f32 0.10936069, %v871_v39  ;;  %v925_v10 = vld [vmem:[#allocation5 + $0x28] sm:$0xff] }
  0x2b   :  { %1372 = vst [vmem:[#allocation37_spill] sm:$0xff] %v917_v62  ;;  %v108_v63 = vadd.f32 %v106_v50, %v104_v49  ;;  %v114_v6 = vmul.f32 0.036000773, %v873_v40  ;;  %v927_v12 = vld [vmem:[#allocation5 + $0x30] sm:$0xff]  ;;  %v115_v15 = vmul.f32 0.036000773, %v875_v41  ;;  %v945_v49 = vmul.f32 %v858_v33, %v858_v33 }
  0x2c   :  { %v109_v13 = vadd.f32 %v107_v58, %v105_v57  ;;  %v118_v16 = vmul.f32 0.007598758, %v886_v46  ;;  %v119_v21 = vmul.f32 0.007598758, %v888_v47  ;;  %v191_v22 = vmul.f32 0.0010283801, %v890_v48 }
  0x2d   :  { %v112_v19 = vadd.f32 %v110_v59, %v108_v63  ;;  %v192_v24 = vmul.f32 0.0010283801, %v905_v55  ;;  %v193_v29 = vmul.f32 0.007598758, %v907_v56  ;;  %v194_v30 = vmul.f32 0.007598758, %v915_v61 }
  0x2e   :  { %v113_v25 = vadd.f32 %v111_v4, %v109_v13  ;;  %v197_v35 = vmul.f32 0.036000773, %v917_v62  ;;  %v122_v42 = vmul.f32 0.0010283801, %v901_v53  ;;  %v123_v43 = vmul.f32 0.0010283801, %v903_v54 }
  0x2f   :  { %v116_v36 = vadd.f32 %v114_v6, %v112_v19  ;;  %v195_v57 = vadd.f32 %v193_v29, %v191_v22  ;;  %v196_v58 = vadd.f32 %v194_v30, %v192_v24  ;;  %v198_v59 = vmul.f32 0.036000773, %v925_v10  ;;  %v948_v63 = vld [vmem:[#allocation5 + $0x38] sm:$0xff]  ;;  %v950_v4 = vld [vmem:[#allocation5 + $0x40] sm:$0xff]  ;;  %v1015_v14 = vld [vmem:[#allocation5 + $0x68] sm:$0xff]  ;;  %s784_s0 = smov [#allocation7]  }
  0x30   :  { %v117_v50 = vadd.f32 %v115_v15, %v113_v25  ;;  %v201_v6 = vmul.f32 0.10936069, %v927_v12  ;;  %v955_v19 = vmul.f32 %v860_v34, %v860_v34  ;;  %v959_v33 = vmul.f32 %v871_v39, %v871_v39  ;;  %1375 = vst [vmem:[#allocation40_spill] sm:$0xff] %v1015_v14  ;;  %v1017_v11 = vld [vmem:[#allocation5 + $0x70] sm:$0xff]  ;;  %v1020_v5 = vld [vmem:[#allocation5 + $0x78] sm:$0xff]  ;;  %v1028_v0 = vld [vmem:[#allocation5 + $0x80] sm:$0xff] }
  0x31   :  { %v120_v13 = vadd.f32 %v118_v16, %v116_v36  ;;  %v199_v22 = vadd.f32 %v197_v35, %v195_v57  ;;  %v963_v24 = vmul.f32 %v873_v40, %v873_v40  ;;  %v967_v25 = vmul.f32 %v875_v41, %v875_v41  ;;  %v969_v16 = vld [vmem:[#allocation5 + $0x48] sm:$0xff]  ;;  %v983_v35 = vld [vmem:[#allocation5 + $0x50] sm:$0xff]  ;;  %1376 = vst [vmem:[#allocation41_spill] sm:$0xff] %v1017_v11  ;;  %s697_s1 = sshll.u32 %s784_s0, 4  ;;  %s698_s1 = int_to_ptr.vmem [resolvable:$true] %s697_s1 }
  0x32   :  { %v121_v15 = vadd.f32 %v119_v21, %v117_v50  ;;  %v973_v30 = vmul.f32 %v886_v46, %v886_v46  ;;  %v977_v36 = vmul.f32 %v888_v47, %v888_v47  ;;  %v981_v21 = vmul.f32 %v901_v53, %v901_v53  ;;  %v985_v50 = vld [vmem:[#allocation5 + $0x58] sm:$0xff]  ;;  %1377 = vst [vmem:[#allocation42_spill] sm:$0xff] %v1020_v5  ;;  %s754_s21 = scalar_lea.vmem %s698_s1, 16  ;;  %s758_s22 = scalar_lea.vmem %s698_s1, 32 }
  0x33   :  { %v124_v29 = vadd.f32 %v122_v42, %v120_v13  ;;  %v200_v42 = vadd.f32 %v198_v59, %v196_v58  ;;  %v202_v13 = vmul.f32 0.10936069, %v948_v63  ;;  %v205_v46 = vmul.f32 0.21300554, %v950_v4  ;;  %v1002_v58 = vld [vmem:[#allocation5 + $0x60] sm:$0xff]  ;;  %1379 = vst [vmem:[#allocation44_spill] sm:$0xff] %v1028_v0  ;;  %p755_p10 = scmp.ne.s32.totalorder %s698_s1, %s754_s21  ;;  %p759_p11 = scmp.lt.s32.totalorder %s698_s1, %s698_s1 }
  0x34   :  { %v987_v57 = vadd.f32 %v123_v43, %v121_v15  ;;  %v203_v39 = vadd.f32 %v201_v6, %v199_v22  ;;  %v1000_v43 = vmul.f32 %v903_v54, %v903_v54  ;;  %1373 = vst [vmem:[#allocation38_spill] sm:$0xff] %v1002_v58  ;;  %v1009_v6 = vmul.f32 %v890_v48, %v890_v48  ;;  %p760_p12 = scmp.lt.s32.totalorder %s758_s22, %s754_s21 }
  0x35   :  { %v126_v41 = vmul.f32 0.0010283801, %v124_v29  ;;  %v127_v40 = vmul.f32 0.007598758, %v124_v29  ;;  %v132_v47 = vmul.f32 0.036000773, %v124_v29  ;;  %v1026_v48 = vmul.f32 %v905_v55, %v905_v55 }
  0x36   :  { %v991_v34 = vmul.f32 0.10936069, %v124_v29  ;;  %v994_v53 = vmul.f32 0.10936069, %v987_v57  ;;  %v996_v28 = vmul.f32 0.21300554, %v124_v29  ;;  %v207_v9 = vadd.f32 %v205_v46, %v203_v39  ;;  %p761_p13 = por %p760_p12, %p759_p11 }
  0x37   :  { %v129_v59 = vrot.slane %v127_v40, 1  ;;  %v134_v15 = vrot.slane %v132_v47, 2  ;;  %v1005_v23 = vmul.f32 0.21300554, %v987_v57  ;;  %1374 = vst [vmem:[#allocation39_spill] sm:$0xff] %v1009_v6  ;;  %vm161_vm2 = vcmask 1042432  }
  0x38   :  { %v142_v22 = vrot.slane %v991_v34, 3  ;;  %v143_v20 = vrot.slane %v994_v53, 3  ;;  %v206_v17 = vmul.f32 0.21300554, %v969_v16  ;;  %v209_v54 = vmul.f32 0.26601171, %v983_v35  ;;  %p762_p0 = pnand %p761_p13, %p755_p10 }
  0x39   :  { %v131_v40 = vadd.f32 %v129_v59, %v126_v41  ;;  %v204_v47 = vadd.f32 %v202_v13, %v200_v42  ;;  %v210_v7 = vmul.f32 0.26601171, %v985_v50  ;;  %v152_v3 = vrot.slane %v996_v28, 4  ;;  %1378 = vst [vmem:[#allocation43_spill] sm:$0xff] %v1026_v48 }
  0x3a   :  { %v157_v2 = vmul.f32 0.26601171, %v124_v29  ;;  %v213_v1 = vmul.f32 0.21300554, %v1002_v58  ;;  %v144_v41 = vsel %vm141_vm0, %v142_v22, %v143_v20  ;;  %v153_v39 = vrot.slane %v1005_v23, 4 }
  0x3b   :  { %v136_v6 = vadd.f32 %v134_v15, %v131_v40  ;;  %v158_v46 = vmul.f32 0.26601171, %v987_v57  ;;  %v214_v42 = vmul.f32 0.21300554, %v1015_v14  ;;  %v1036_v29 = vmul.f32 %v907_v56, %v907_v56  ;;  %v1046_v15 = vld [vmem:[#allocation5 + $0x88] sm:$0xff]  ;;  %v1050_v56 = vld [vmem:[#allocation5 + $0x90] sm:$0xff] }
  0x3c   :  { %v1040_v13 = vmul.f32 %v915_v61, %v915_v61  ;;  %v1044_v59 = vmul.f32 %v917_v62, %v917_v62  ;;  %vm167_vm3 = vcmask 1041408   ;;  %vm173_vm4 = vcmask 1040384   ;;  %v1054_v62 = vld [vmem:[#allocation5 + $0x98] sm:$0xff] }
  0x3d   :  { %1380 = vst [vmem:[#allocation45_spill] sm:$0xff] %v1036_v29  ;;  %v208_v20 = vadd.f32 %v206_v17, %v204_v47  ;;  %v211_v22 = vadd.f32 %v209_v54, %v207_v9  ;;  %v217_v40 = vmul.f32 0.10936069, %v1017_v11  ;;  %v218_v55 = vmul.f32 0.10936069, %v1020_v5 }
  0x3e   :  { %1381 = vst [vmem:[#allocation46_spill] sm:$0xff] %v1040_v13  ;;  %1382 = vst [vmem:[#allocation47_spill] sm:$0xff] %v1044_v59  ;;  %v146_v14 = vadd.f32 %v144_v41, %v136_v6  ;;  %v162_v29 = vrot.slane %v157_v2, 5  ;;  %v168_v61 = vrot.slane %v996_v28, 6  ;;  %v221_v13 = vmul.f32 0.036000773, %v1028_v0 }
  0x3f   :  { %v1056_v59 = vld [vmem:[#allocation5 + $0xa0] sm:$0xff]  ;;  %v154_v48 = vsel %vm151_vm1, %v152_v3, %v153_v39  ;;  %v163_v17 = vrot.slane %v158_v46, 5  ;;  %v212_v9 = vadd.f32 %v210_v7, %v208_v20  ;;  %v215_v54 = vadd.f32 %v213_v1, %v211_v22  ;;  %v1063_v28 = vld [vmem:[#allocation5 + $0xa8] sm:$0xff] }
  0x40   :  { %v169_v47 = vrot.slane %v1005_v23, 6  ;;  %v174_v5 = vrot.slane %v991_v34, 7  ;;  %v222_v6 = vmul.f32 0.036000773, %v1046_v15  ;;  %v319_v2 = vmul.f32 0.0010283801, %v841_v26 }
  0x41   :  { %v216_v41 = vadd.f32 %v214_v42, %v212_v9  ;;  %v219_v0 = vadd.f32 %v217_v40, %v215_v54  ;;  %v225_v11 = vmul.f32 0.007598758, %v1050_v56  ;;  %v320_v58 = vmul.f32 0.0010283801, %v845_v27 }
  0x42   :  { %v156_v3 = vadd.f32 %v154_v48, %v146_v14  ;;  %v321_v7 = vmul.f32 0.007598758, %v852_v31  ;;  %v322_v1 = vmul.f32 0.007598758, %v856_v32  ;;  %v325_v23 = vmul.f32 0.036000773, %v865_v37 }
  0x43   :  { %v220_v34 = vadd.f32 %v218_v55, %v216_v41  ;;  %v223_v39 = vadd.f32 %v221_v13, %v219_v0  ;;  %v226_v46 = vmul.f32 0.007598758, %v1054_v62  ;;  %v229_v26 = vmul.f32 0.0010283801, %v1056_v59 }
  0x44   :  { %v164_v42 = vsel %vm161_vm2, %v162_v29, %v163_v17  ;;  %v175_v20 = vrot.slane %v994_v53, 7  ;;  %v230_v22 = vmul.f32 0.0010283801, %v1063_v28  ;;  %v323_v27 = vadd.f32 %v321_v7, %v319_v2 }
  0x45   :  { %v224_v14 = vadd.f32 %v222_v6, %v220_v34  ;;  %v227_v48 = vadd.f32 %v225_v11, %v223_v39  ;;  %v324_v31 = vadd.f32 %v322_v1, %v320_v58  ;;  %v326_v32 = vmul.f32 0.036000773, %v869_v38 }
  0x46   :  { %v327_v40 = vadd.f32 %v325_v23, %v323_v27  ;;  %v329_v37 = vmul.f32 0.10936069, %v880_v44  ;;  %v1079_v0 = vmul.f32 %v925_v10, %v925_v10  ;;  %v1083_v55 = vmul.f32 %v927_v12, %v927_v12 }
  0x47   :  { %v166_v53 = vadd.f32 %v164_v42, %v156_v3  ;;  %v179_v29 = vmul.f32 0.036000773, %v987_v57  ;;  %v228_v13 = vadd.f32 %v226_v46, %v224_v14  ;;  %v231_v17 = vadd.f32 %v229_v26, %v227_v48 }
  0x48   :  { %v170_v11 = vsel %vm167_vm3, %v168_v61, %v169_v47  ;;  %v176_v38 = vsel %vm173_vm4, %v174_v5, %v175_v20  ;;  %v330_v58 = vmul.f32 0.10936069, %v884_v45  ;;  %v333_v44 = vmul.f32 0.21300554, %v895_v51 }
  0x49   :  { %v1090_v9 = vadd.f32 %v230_v22, %v228_v13  ;;  %v233_v54 = vmul.f32 0.0010283801, %v231_v17  ;;  %v234_v6 = vmul.f32 0.007598758, %v231_v17  ;;  %v328_v2 = vadd.f32 %v326_v32, %v324_v31 }
  0x4a   :  { %v239_v41 = vmul.f32 0.036000773, %v231_v17  ;;  %v1092_v7 = vmul.f32 0.10936069, %v231_v17  ;;  %v1094_v3 = vmul.f32 0.21300554, %v231_v17  ;;  %v331_v1 = vadd.f32 %v329_v37, %v327_v40 }
  0x4b   :  { %v172_v23 = vadd.f32 %v170_v11, %v166_v53  ;;  %v236_v34 = vrot.slane %v234_v6, 1  ;;  %v1097_v61 = vmul.f32 0.10936069, %v1090_v9  ;;  %v254_v5 = vmul.f32 0.21300554, %v1090_v9 }
  0x4c   :  { %v241_v45 = vrot.slane %v239_v41, 2  ;;  %v248_v51 = vrot.slane %v1092_v7, 3  ;;  %v334_v47 = vmul.f32 0.21300554, %v899_v52  ;;  %v337_v39 = vmul.f32 0.26601171, %v913_v60 }
  0x4d   :  { %v238_v46 = vadd.f32 %v236_v34, %v233_v54  ;;  %v249_v26 = vrot.slane %v1097_v61, 3  ;;  %v262_v42 = vmul.f32 0.26601171, %v231_v17  ;;  %v263_v20 = vmul.f32 0.26601171, %v1090_v9 }
  0x4e   :  { %v257_v22 = vrot.slane %v1094_v3, 4  ;;  %v258_v27 = vrot.slane %v254_v5, 4  ;;  %v332_v14 = vadd.f32 %v330_v58, %v328_v2  ;;  %v335_v48 = vadd.f32 %v333_v44, %v331_v1 }
  0x4f   :  { %v178_v31 = vadd.f32 %v176_v38, %v172_v23  ;;  %v181_v32 = vmul.f32 0.007598758, %v987_v57  ;;  %v243_v40 = vadd.f32 %v241_v45, %v238_v46  ;;  %v250_v37 = vsel %vm141_vm0, %v248_v51, %v249_v26 }
  0x50   :  { %v338_v52 = vmul.f32 0.26601171, %v923_v8  ;;  %v341_v60 = vmul.f32 0.21300554, %v933_v18  ;;  %v1112_v53 = vmul.f32 %v948_v63, %v948_v63  ;;  %v1116_v13 = vmul.f32 %v950_v4, %v950_v4 }
  0x51   :  { %v252_v17 = vadd.f32 %v250_v37, %v243_v40  ;;  %v266_v11 = vrot.slane %v262_v42, 5  ;;  %v267_v38 = vrot.slane %v263_v20, 5  ;;  %v1120_v58 = vmul.f32 %v969_v16, %v969_v16 }
  0x52   :  { %v259_v44 = vsel %vm151_vm1, %v257_v22, %v258_v27  ;;  %v336_v8 = vadd.f32 %v334_v47, %v332_v14  ;;  %v339_v54 = vadd.f32 %v337_v39, %v335_v48  ;;  %v342_v18 = vmul.f32 0.21300554, %v945_v49 }
  0x53   :  { %v180_v6 = vadd.f32 %v179_v29, %v178_v31  ;;  %v183_v2 = vrot.slane %v181_v32, 1  ;;  %v1125_v41 = vmul.f32 0.0010283801, %v987_v57  ;;  %v345_v1 = vmul.f32 0.10936069, %v955_v19 }
  0x54   :  { %v340_v23 = vadd.f32 %v338_v52, %v336_v8  ;;  %v343_v34 = vadd.f32 %v341_v60, %v339_v54  ;;  %v346_v45 = vmul.f32 0.10936069, %v959_v33  ;;  %v349_v51 = vmul.f32 0.036000773, %v963_v24  ;;  %v1385_v54 = vld [vmem:[#allocation43_spill] sm:$0xff] }
  0x55   :  { %v261_v46 = vadd.f32 %v259_v44, %v252_v17  ;;  %v268_v26 = vsel %vm161_vm2, %v266_v11, %v267_v38  ;;  %v271_v47 = vrot.slane %v1094_v3, 6  ;;  %v272_v39 = vrot.slane %v254_v5, 6  ;;  %v1383_v17 = vld [vmem:[#allocation38_spill] sm:$0xff]  ;;  %v1384_v38 = vld [vmem:[#allocation39_spill] sm:$0xff] }
  0x56   :  { %v344_v49 = vadd.f32 %v342_v18, %v340_v23  ;;  %v347_v29 = vadd.f32 %v345_v1, %v343_v34  ;;  %v350_v42 = vmul.f32 0.036000773, %v967_v25  ;;  %v353_v57 = vmul.f32 0.007598758, %v973_v30  ;;  %v1386_v18 = vld [vmem:[#allocation45_spill] sm:$0xff] }
  0x57   :  { %v188_v19 = vrot.slane %v1125_v41, 2  ;;  %v276_v20 = vrot.slane %v1092_v7, 7  ;;  %v277_v33 = vrot.slane %v1097_v61, 7  ;;  %v1138_v24 = vmul.f32 0.007598758, %v1090_v9 }
  0x58   :  { %v348_v22 = vadd.f32 %v346_v45, %v344_v49  ;;  %v351_v27 = vadd.f32 %v349_v51, %v347_v29  ;;  %v354_v3 = vmul.f32 0.007598758, %v977_v36  ;;  %v357_v5 = vmul.f32 0.0010283801, %v981_v21 }
  0x59   :  { %v1142_v14 = vadd.f32 %v183_v2, %v180_v6  ;;  %v270_v25 = vadd.f32 %v268_v26, %v261_v46  ;;  %v1146_v30 = vmul.f32 %v983_v35, %v983_v35  ;;  %v1150_v7 = vmul.f32 %v985_v50, %v985_v50  ;;  %v1387_v2 = vld [vmem:[#allocation46_spill] sm:$0xff] }
  0x5a   :  { %v273_v61 = vsel %vm167_vm3, %v271_v47, %v272_v39  ;;  %v352_v48 = vadd.f32 %v350_v42, %v348_v22  ;;  %v355_v31 = vadd.f32 %v353_v57, %v351_v27  ;;  %v358_v32 = vmul.f32 0.0010283801, %v1000_v43  ;;  %v1388_v47 = vld [vmem:[#allocation40_spill] sm:$0xff]  ;;  %v1389_v22 = vld [vmem:[#allocation47_spill] sm:$0xff] }
  0x5b   :  { %v278_v36 = vsel %vm173_vm4, %v276_v20, %v277_v33  ;;  %v1156_v21 = vmul.f32 0.036000773, %v1090_v9  ;;  %v1160_v37 = vmul.f32 0.0010283801, %v1090_v9  ;;  %v434_v11 = vmul.f32 %v1383_v17, %v1383_v17 }
  0x5c   :  { %v356_v52 = vadd.f32 %v354_v3, %v352_v48  ;;  %v359_v60 = vadd.f32 %v357_v5, %v355_v31  ;;  %v444_v44 = vmul.f32 0.0010283801, %v1384_v38  ;;  %v275_v8 = vadd.f32 %v273_v61, %v270_v25 }
  0x5d   :  { %v445_v43 = vmul.f32 0.0010283801, %v1385_v54  ;;  %v446_v6 = vmul.f32 0.007598758, %v1386_v18  ;;  %v447_v1 = vmul.f32 0.007598758, %v1387_v2  ;;  %v435_v39 = vmul.f32 %v1388_v47, %v1388_v47 }
  0x5e   :  { %v1168_v23 = vadd.f32 %v358_v32, %v356_v52  ;;  %v361_v34 = vmul.f32 0.0010283801, %v359_v60  ;;  %v362_v45 = vmul.f32 0.007598758, %v359_v60  ;;  %v367_v9 = vmul.f32 0.036000773, %v359_v60 }
  0x5f   :  { %v1170_v51 = vmul.f32 0.10936069, %v359_v60  ;;  %v381_v46 = vmul.f32 0.21300554, %v359_v60  ;;  %v390_v26 = vmul.f32 0.26601171, %v359_v60  ;;  %v448_v52 = vadd.f32 %v446_v6, %v444_v44 }
  0x60   :  { %v364_v49 = vrot.slane %v362_v45, 1  ;;  %v369_v29 = vrot.slane %v367_v9, 2  ;;  %v373_v42 = vmul.f32 0.10936069, %v1168_v23  ;;  %v382_v57 = vmul.f32 0.21300554, %v1168_v23 }
  0x61   :  { %v376_v20 = vrot.slane %v1170_v51, 3  ;;  %v385_v33 = vrot.slane %v381_v46, 4  ;;  %v450_v27 = vmul.f32 0.036000773, %v1389_v22  ;;  %v451_v3 = vmul.f32 0.036000773, %v1079_v0 }
  0x62   :  { %v366_v5 = vadd.f32 %v364_v49, %v361_v34  ;;  %v377_v25 = vrot.slane %v373_v42, 3  ;;  %v386_v61 = vrot.slane %v382_v57, 4  ;;  %v391_v48 = vmul.f32 0.26601171, %v1168_v23  ;;  %v1390_v9 = vld [vmem:[#allocation41_spill] sm:$0xff]  ;;  %v1391_v0 = vld [vmem:[#allocation42_spill] sm:$0xff] }
  0x63   :  { %v394_v31 = vrot.slane %v390_v26, 5  ;;  %v399_v32 = vrot.slane %v381_v46, 6  ;;  %v449_v60 = vadd.f32 %v447_v1, %v445_v43  ;;  %v400_v2 = vrot.slane %v382_v57, 6  ;;  %v1392_v46 = vld [vmem:[#allocation44_spill] sm:$0xff] }
  0x64   :  { %v371_v38 = vadd.f32 %v369_v29, %v366_v5  ;;  %v378_v54 = vsel %vm141_vm0, %v376_v20, %v377_v25  ;;  %v395_v18 = vrot.slane %v391_v48, 5  ;;  %v387_v45 = vsel %vm151_vm1, %v385_v33, %v386_v61 }
  0x65   :  { %v436_v22 = vmul.f32 %v1390_v9, %v1390_v9  ;;  %v437_v34 = vmul.f32 %v1391_v0, %v1391_v0  ;;  %v454_v49 = vmul.f32 0.10936069, %v1083_v55  ;;  %v280_v40 = vadd.f32 %v278_v36, %v275_v8 }
  0x66   :  { %v380_v26 = vadd.f32 %v378_v54, %v371_v38  ;;  %v438_v44 = vmul.f32 %v1392_v46, %v1392_v46  ;;  %v439_v43 = vmul.f32 %v1046_v15, %v1046_v15  ;;  %v396_v6 = vsel %vm161_vm2, %v394_v31, %v395_v18 }
  0x67   :  { %v452_v1 = vadd.f32 %v450_v27, %v448_v52  ;;  %v453_v29 = vadd.f32 %v451_v3, %v449_v60  ;;  %v455_v57 = vmul.f32 0.10936069, %v1112_v53  ;;  %v401_v33 = vsel %vm167_vm3, %v399_v32, %v400_v2 }
  0x68   :  { %v389_v20 = vadd.f32 %v387_v45, %v380_v26  ;;  %v440_v55 = vmul.f32 %v1050_v56, %v1050_v56  ;;  %v458_v36 = vmul.f32 0.21300554, %v1116_v13  ;;  %v459_v25 = vmul.f32 0.21300554, %v1120_v58 }
  0x69   :  { %v456_v8 = vadd.f32 %v454_v49, %v452_v1  ;;  %v457_v5 = vadd.f32 %v455_v57, %v453_v29  ;;  %v462_v61 = vmul.f32 0.26601171, %v1146_v30  ;;  %v404_v27 = vrot.slane %v1170_v51, 7 }
  0x6a   :  { %v398_v48 = vadd.f32 %v396_v6, %v389_v20  ;;  %v405_v3 = vrot.slane %v373_v42, 7  ;;  %v463_v53 = vmul.f32 0.26601171, %v1150_v7  ;;  %v466_v32 = vmul.f32 0.21300554, %v434_v11 }
  0x6b   :  { %v460_v31 = vadd.f32 %v458_v36, %v456_v8  ;;  %v461_v52 = vadd.f32 %v459_v25, %v457_v5  ;;  %v467_v60 = vmul.f32 0.21300554, %v435_v39  ;;  %v441_v38 = vmul.f32 %v1054_v62, %v1054_v62  ;;  %v1396_v25 = vld [vmem:[#allocation12_spill] sm:$0xff] }
  0x6c   :  { %v442_v13 = vmul.f32 %v1056_v59, %v1056_v59  ;;  %v443_v58 = vmul.f32 %v1063_v28, %v1063_v28  ;;  %v470_v30 = vmul.f32 0.10936069, %v436_v22  ;;  %v403_v54 = vadd.f32 %v401_v33, %v398_v48 }
  0x6d   :  { %v464_v18 = vadd.f32 %v462_v61, %v460_v31  ;;  %v465_v51 = vadd.f32 %v463_v53, %v461_v52  ;;  %v471_v42 = vmul.f32 0.10936069, %v437_v34  ;;  %v282_v7 = vadd.f32 %v1156_v21, %v280_v40  ;;  %v1397_v61 = vld [vmem:[#allocation34_spill] sm:$0xff]  ;;  %v1401_v31 = vld [vmem:[#allocation36_spill] sm:$0xff] }
  0x6e   :  { %v406_v2 = vsel %vm173_vm4, %v404_v27, %v405_v3  ;;  %v1210_v11 = vmul.f32 0.007598758, %v1168_v23  ;;  %v1213_v39 = vmul.f32 0.0010283801, %v1168_v23  ;;  %v474_v26 = vmul.f32 0.036000773, %v438_v44 }
  0x6f   :  { %v468_v45 = vadd.f32 %v466_v32, %v464_v18  ;;  %v469_v49 = vadd.f32 %v467_v60, %v465_v51  ;;  %v475_v6 = vmul.f32 0.036000773, %v439_v43  ;;  %v1218_v22 = vadd.f32 %v188_v19, %v1142_v14  ;;  %v1398_v27 = vld [vmem:[#allocation13_spill] sm:$0xff]  ;;  %v1400_v53 = vld [vmem:[#allocation14_spill] sm:$0xff] }
  0x70   :  { %v409_v34 = vmul.f32 0.036000773, %v1168_v23  ;;  %v478_v21 = vmul.f32 0.007598758, %v440_v55  ;;  %v408_v40 = vadd.f32 %v406_v2, %v403_v54  ;;  %v479_v57 = vmul.f32 0.007598758, %v441_v38 }
  0x71   :  { %v472_v1 = vadd.f32 %v470_v30, %v468_v45  ;;  %v473_v29 = vadd.f32 %v471_v42, %v469_v49  ;;  %v1393_v20 = vrot.slane %v1138_v24, 1  ;;  %v290_v36 = vrot.slane %v1160_v37, 2  ;;  %v1394_v23 = vld [vmem:[#allocation11_spill] sm:$0xff]  ;;  %v1403_v54 = vld [vmem:[#allocation37_spill] sm:$0xff] }
  0x72   :  { %v413_v44 = vrot.slane %v1210_v11, 1  ;;  %v418_v43 = vrot.slane %v1213_v39, 2  ;;  %v482_v14 = vmul.f32 0.0010283801, %v442_v13  ;;  %v483_v8 = vmul.f32 0.0010283801, %v443_v58 }
  0x73   :  { %v1223_v33 = vadd.f32 %v1393_v20, %v282_v7  ;;  %v476_v41 = vadd.f32 %v474_v26, %v472_v1  ;;  %v477_v19 = vadd.f32 %v475_v6, %v473_v29  ;;  %v1395_v55 = vld [vmem:[#allocation31_spill] sm:$0xff]  ;;  %v548_v48 = vmul.f32 %v1397_v61, %v1396_v25  ;;  %v1404_v58 = vld [vmem:[#allocation16_spill] sm:$0xff]  ;;  %v1405_v51 = vld [vmem:[#allocation17_spill] sm:$0xff] }
  0x74   :  { %v547_v5 = vmul.f32 %v1395_v55, %v1394_v23  ;;  %v1399_v24 = vld [vmem:[#allocation35_spill] sm:$0xff]  ;;  %v550_v52 = vmul.f32 %v1401_v31, %v1400_v53  ;;  %v1236_v32 = vadd.f32 %v409_v34, %v408_v40  ;;  %v552_v18 = vmul.f32 %v925_v10, %v1404_v58  ;;  %v1406_v7 = vld [vmem:[#allocation18_spill] sm:$0xff]  ;;  %v1408_v34 = vld [vmem:[#allocation20_spill] sm:$0xff] }
  0x75   :  { %v549_v3 = vmul.f32 %v1399_v24, %v1398_v27  ;;  %v480_v60 = vadd.f32 %v478_v21, %v476_v41  ;;  %v481_v38 = vadd.f32 %v479_v57, %v477_v19  ;;  %v1402_v30 = vld [vmem:[#allocation15_spill] sm:$0xff]  ;;  %v553_v42 = vmul.f32 %v927_v12, %v1405_v51  ;;  %v1409_v40 = vld [vmem:[#allocation21_spill] sm:$0xff]  ;;  %v1410_v29 = vld [vmem:[#allocation22_spill] sm:$0xff] }
  0x76   :  { %v551_v13 = vmul.f32 %v1403_v54, %v1402_v30  ;;  %v554_v2 = vmul.f32 %v948_v63, %v1406_v7  ;;  %v1407_v45 = vld [vmem:[#allocation19_spill] sm:$0xff]  ;;  %v556_v21 = vmul.f32 %v969_v16, %v1408_v34  ;;  %v557_v1 = vmul.f32 %v983_v35, %v1409_v40  ;;  %v1412_v16 = vld [vmem:[#allocation24_spill] sm:$0xff]  ;;  %v1413_v51 = vld [vmem:[#allocation25_spill] sm:$0xff] }
  0x77   :  { %v555_v49 = vmul.f32 %v950_v4, %v1407_v45  ;;  %v484_v26 = vadd.f32 %v482_v14, %v480_v60  ;;  %v1248_v6 = vadd.f32 %v483_v8, %v481_v38  ;;  %v558_v10 = vmul.f32 %v985_v50, %v1410_v29  ;;  %v1411_v23 = vld [vmem:[#allocation23_spill] sm:$0xff]  ;;  %v1414_v45 = vld [vmem:[#allocation26_spill] sm:$0xff] }
  0x78   :  { %v569_v57 = vmul.f32 0.0010283801, %v547_v5  ;;  %v570_v12 = vmul.f32 0.0010283801, %v548_v48  ;;  %v571_v20 = vmul.f32 0.007598758, %v549_v3  ;;  %v559_v4 = vmul.f32 %v1383_v17, %v1411_v23 }
  0x79   :  { %v486_v41 = vmul.f32 0.0010283801, %v484_v26  ;;  %v487_v63 = vmul.f32 0.007598758, %v484_v26  ;;  %v492_v19 = vmul.f32 0.036000773, %v484_v26  ;;  %v560_v25 = vmul.f32 %v1388_v47, %v1412_v16 }
  0x7a   :  { %v497_v14 = vmul.f32 0.10936069, %v484_v26  ;;  %v498_v8 = vmul.f32 0.10936069, %v1248_v6  ;;  %v506_v55 = vmul.f32 0.21300554, %v484_v26  ;;  %v573_v58 = vadd.f32 %v571_v20, %v569_v57 }
  0x7b   :  { %v489_v35 = vrot.slane %v487_v63, 1  ;;  %v494_v61 = vrot.slane %v492_v19, 2  ;;  %v507_v50 = vmul.f32 0.21300554, %v1248_v6  ;;  %v515_v5 = vmul.f32 0.26601171, %v484_v26 }
  0x7c   :  { %v501_v48 = vrot.slane %v497_v14, 3  ;;  %v502_v27 = vrot.slane %v498_v8, 3  ;;  %v510_v24 = vrot.slane %v506_v55, 4  ;;  %v516_v3 = vmul.f32 0.26601171, %v1248_v6  ;;  %v1415_v34 = vld [vmem:[#allocation27_spill] sm:$0xff] }
  0x7d   :  { %v491_v53 = vadd.f32 %v489_v35, %v486_v41  ;;  %v511_v31 = vrot.slane %v507_v50, 4  ;;  %v572_v17 = vmul.f32 0.007598758, %v550_v52  ;;  %v575_v60 = vmul.f32 0.036000773, %v551_v13  ;;  %v1416_v13 = vld [vmem:[#allocation28_spill] sm:$0xff] }
  0x7e   :  { %v503_v38 = vsel %vm141_vm0, %v501_v48, %v502_v27  ;;  %v519_v30 = vrot.slane %v515_v5, 5  ;;  %v520_v54 = vrot.slane %v516_v3, 5  ;;  %v561_v7 = vmul.f32 %v1390_v9, %v1413_v51 }
  0x7f   :  { %v496_v47 = vadd.f32 %v494_v61, %v491_v53  ;;  %v562_v26 = vmul.f32 %v1391_v0, %v1414_v45  ;;  %v563_v40 = vmul.f32 %v1392_v46, %v1415_v34  ;;  %v512_v29 = vsel %vm151_vm1, %v510_v24, %v511_v31  ;;  %v1417_v53 = vld [vmem:[#allocation29_spill] sm:$0xff] }
  0x80   :  { %v524_v41 = vrot.slane %v506_v55, 6  ;;  %v525_v52 = vrot.slane %v507_v50, 6  ;;  %v564_v63 = vmul.f32 %v1046_v15, %v1416_v13  ;;  %v529_v23 = vrot.slane %v497_v14, 7 }
  0x81   :  { %v505_v19 = vadd.f32 %v503_v38, %v496_v47  ;;  %v574_v57 = vadd.f32 %v572_v17, %v570_v12  ;;  %v576_v20 = vmul.f32 0.036000773, %v552_v18  ;;  %v521_v16 = vsel %vm161_vm2, %v519_v30, %v520_v54 }
  0x82   :  { %v530_v9 = vrot.slane %v498_v8, 7  ;;  %v577_v35 = vadd.f32 %v575_v60, %v573_v58  ;;  %v579_v61 = vmul.f32 0.10936069, %v553_v42  ;;  %v580_v48 = vmul.f32 0.10936069, %v554_v2 }
  0x83   :  { %v514_v0 = vadd.f32 %v512_v29, %v505_v19  ;;  %v578_v5 = vadd.f32 %v576_v20, %v574_v57  ;;  %v583_v46 = vmul.f32 0.21300554, %v555_v49  ;;  %v526_v27 = vsel %vm167_vm3, %v524_v41, %v525_v52 }
  0x84   :  { %v581_v55 = vadd.f32 %v579_v61, %v577_v35  ;;  %v584_v50 = vmul.f32 0.21300554, %v556_v21  ;;  %v587_v24 = vmul.f32 0.26601171, %v557_v1  ;;  %v536_v15 = vmul.f32 0.007598758, %v1248_v6 }
  0x85   :  { %v523_v3 = vadd.f32 %v521_v16, %v514_v0  ;;  %v582_v14 = vadd.f32 %v580_v48, %v578_v5  ;;  %v588_v12 = vmul.f32 0.26601171, %v558_v10  ;;  %v531_v18 = vsel %vm173_vm4, %v529_v23, %v530_v9  ;;  %v1418_v1 = vld [vmem:[#allocation30_spill] sm:$0xff] }
  0x86   :  { %v565_v8 = vmul.f32 %v1050_v56, %v1417_v53  ;;  %v585_v42 = vadd.f32 %v583_v46, %v581_v55  ;;  %v591_v31 = vmul.f32 0.21300554, %v559_v4  ;;  %v534_v2 = vmul.f32 0.036000773, %v1248_v6  ;;  %v1419_v4 = vld [vmem:[#allocation32_spill] sm:$0xff] }
  0x87   :  { %v528_v17 = vadd.f32 %v526_v27, %v523_v3  ;;  %v586_v49 = vadd.f32 %v584_v50, %v582_v14  ;;  %v592_v60 = vmul.f32 0.21300554, %v560_v25  ;;  %v541_v21 = vmul.f32 0.0010283801, %v1248_v6  ;;  %v1420_v6 = vld [vmem:[#allocation33_spill] sm:$0xff] }
  0x88   :  { %v566_v38 = vmul.f32 %v1054_v62, %v1418_v1  ;;  %v589_v30 = vadd.f32 %v587_v24, %v585_v42  ;;  %v595_v54 = vmul.f32 0.10936069, %v561_v7  ;;  %v538_v58 = vrot.slane %v536_v15, 1 }
  0x89   :  { %v533_v10 = vadd.f32 %v531_v18, %v528_v17  ;;  %v590_v47 = vadd.f32 %v588_v12, %v586_v49  ;;  %v596_v51 = vmul.f32 0.10936069, %v562_v26  ;;  %v415_v56 = vadd.f32 %v413_v44, %v1236_v32 }
  0x8a   :  { %v567_v45 = vmul.f32 %v1056_v59, %v1419_v4  ;;  %v593_v34 = vadd.f32 %v591_v31, %v589_v30  ;;  %v599_v25 = vmul.f32 0.036000773, %v563_v40  ;;  %v568_v41 = vmul.f32 %v1063_v28, %v1420_v6 }
  0x8b   :  { %v535_v29 = vadd.f32 %v534_v2, %v533_v10  ;;  %v594_v62 = vadd.f32 %v592_v60, %v590_v47  ;;  %v600_v52 = vmul.f32 0.036000773, %v564_v63  ;;  %v292_v7 = vadd.f32 %v290_v36, %v1223_v33 }
  0x8c   :  { %v543_v26 = vrot.slane %v541_v21, 2  ;;  %v597_v13 = vadd.f32 %v595_v54, %v593_v34  ;;  %v603_v19 = vmul.f32 0.007598758, %v565_v8  ;;  %v604_v32 = vmul.f32 0.007598758, %v566_v38 }
  0x8d   :  { %v540_v11 = vadd.f32 %v538_v58, %v535_v29  ;;  %v598_v44 = vadd.f32 %v596_v51, %v594_v62  ;;  %v607_v59 = vmul.f32 0.0010283801, %v567_v45  ;;  %v293_v40 = vmul.f32 %v1218_v22, %v1218_v22 }
  0x8e   :  { %v601_v23 = vadd.f32 %v599_v25, %v597_v13  ;;  %v420_v28 = vadd.f32 %v418_v43, %v415_v56  ;;  %v608_v63 = vmul.f32 0.0010283801, %v568_v41  ;;  %v294_v20 = vmul.f32 %v292_v7, %v292_v7 }
  0x8f   :  { %v602_v57 = vadd.f32 %v600_v52, %v598_v44  ;;  %v545_v16 = vadd.f32 %v543_v26, %v540_v11  ;;  %v295_v62 = vmul.f32 %v292_v7, %v1218_v22  ;;  %vm682_vm5 = vcmask 1045504  }
  0x90   :  { %v605_v37 = vadd.f32 %v603_v19, %v601_v23  ;;  %v421_v9 = vsub.f32 %v420_v28, %v293_v40  ;;  %v675_v50 = vadd.f32 %v294_v20, %v293_v40 }
  0x91   :  { %v606_v33 = vadd.f32 %v604_v32, %v602_v57  ;;  %v546_v61 = vsub.f32 %v545_v16, %v294_v20  ;;  %v296_v11 = vadd.f32 %v295_v62, %v295_v62 }
  0x92   :  { %v609_v36 = vadd.f32 %v607_v59, %v605_v37  ;;  %v676_v60 = vadd.f32 0.0001, %v675_v50 }
  0x93   :  { %v610_v35 = vadd.f32 %v608_v63, %v606_v33  ;;  %v677_v42 = vadd.f32 %v546_v61, %v421_v9  ;;  %v672_v59 = vadd.f32 0.0001, %v296_v11 }
  0x94   :  { %v611_v0 = vmul.f32 0.0020567602, %v609_v36  ;;  %v612_v5 = vmul.f32 0.015197516, %v609_v36  ;;  %v617_v48 = vmul.f32 0.07200155, %v609_v36 }
  0x95   :  { %v622_v46 = vmul.f32 0.21872137, %v609_v36  ;;  %v623_v27 = vmul.f32 0.21872137, %v610_v35  ;;  %v631_v55 = vmul.f32 0.4260111, %v609_v36 }
  0x96   :  { %v614_v24 = vrot.slane %v612_v5, 1  ;;  %v619_v39 = vrot.slane %v617_v48, 2  ;;  %v632_v43 = vmul.f32 0.4260111, %v610_v35  ;;  %v640_v3 = vmul.f32 0.53202343, %v609_v36 }
  0x97   :  { %v626_v15 = vrot.slane %v622_v46, 3  ;;  %v627_v14 = vrot.slane %v623_v27, 3  ;;  %v635_v12 = vrot.slane %v631_v55, 4  ;;  %v641_v18 = vmul.f32 0.53202343, %v610_v35 }
  0x98   :  { %v616_v53 = vadd.f32 %v614_v24, %v611_v0  ;;  %v636_v8 = vrot.slane %v632_v43, 4  ;;  %v644_v17 = vrot.slane %v640_v3, 5  ;;  %v649_v1 = vrot.slane %v631_v55, 6 }
  0x99   :  { %v628_v31 = vsel %vm141_vm0, %v626_v15, %v627_v14  ;;  %v645_v2 = vrot.slane %v641_v18, 5  ;;  %v650_v38 = vrot.slane %v632_v43, 6  ;;  %v678_v54 = vadd.f32 0.0009, %v677_v42 }
  0x9a   :  { %v621_v49 = vadd.f32 %v619_v39, %v616_v53  ;;  %v637_v21 = vsel %vm151_vm1, %v635_v12, %v636_v8  ;;  %v654_v58 = vrot.slane %v622_v46, 7  ;;  %v655_v47 = vrot.slane %v623_v27, 7 }
  0x9b   :  { %v646_v10 = vsel %vm161_vm2, %v644_v17, %v645_v2  ;;  %v679_v56 = vmul.f32 %v678_v54, %v676_v60  ;;  %v651_v4 = vsel %vm167_vm3, %v649_v1, %v650_v38  ;;  %v661_v34 = vmul.f32 0.015197516, %v610_v35 }
  0x9c   :  { %v630_v30 = vadd.f32 %v628_v31, %v621_v49  ;;  %v656_v25 = vsel %vm173_vm4, %v654_v58, %v655_v47  ;;  %v659_v6 = vmul.f32 0.07200155, %v610_v35  ;;  %v666_v41 = vmul.f32 0.0020567602, %v610_v35 }
  0x9d   :  { %712 = vrcp.f32 %v679_v56  ;;  %v663_v26 = vrot.slane %v661_v34, 1 }
  0x9e   :  { %v639_v51 = vadd.f32 %v637_v21, %v630_v30  ;;  %v668_v19 = vrot.slane %v666_v41, 2 }
  0xa0   :  { %v648_v45 = vadd.f32 %v646_v10, %v639_v51 }
  0xa2   :  { %v653_v29 = vadd.f32 %v651_v4, %v648_v45 }
  0xa4   :  { %v658_v52 = vadd.f32 %v656_v25, %v653_v29 }
  0xa6   :  { %v660_v13 = vadd.f32 %v659_v6, %v658_v52 }
  0xa8   :  { %v665_v44 = vadd.f32 %v663_v26, %v660_v13 }
  0xaa   :  { %v670_v32 = vadd.f32 %v668_v19, %v665_v44  ;;  %v713_v28 = vpop.eup %712 }
  0xac   :  { %v671_v23 = vsub.f32 %v670_v32, %v296_v11 }
  0xae   :  { %v673_v40 = vadd.f32 0.0009, %v671_v23 }
  0xb0   :  { %v674_v57 = vmul.f32 %v673_v40, %v672_v59 }
  0xb2   :  { %v681_v63 = vmul.f32 %v713_v28, %v674_v57 }
  0xb4   :  { %v683_v20 = vsel %vm682_vm5, %v681_v63, 0.0 }
  0xb5   :  { %v684_v16 = vrot.slane %v683_v20, 4 }
  0xb7   :  { %v685_v37 = vadd.f32 %v684_v16, %v683_v20 }
  0xb9   :  { %v686_v33 = vrot.slane %v685_v37, 2 }
  0xbb   :  { %v687_v36 = vadd.f32 %v686_v33, %v685_v37 }
  0xbd   :  { %v688_v22 = vrot.slane %v687_v36, 1 }
  0xbf   :  { %v689_v7 = vadd.f32 %v688_v22, %v687_v36 }
  0xc1   :  { %690 = vst [vmem:[#allocation7] sm:$0x1] %v689_v7 }
  0xc2   :  { %765 = shalt.err (!%p762_p0)
}
  0xc3   :  { %700 = dma.vmem_to_hbm [thread:$0]  %s698_s1, 16, %s1308_s2, [#allocation4]  }
  0xc4   :  { %778 = dma.done.wait [#allocation4], 16  }
  0xc5   :  { %779 = vsyncadd [#allocation4], 4294967280 }
  0xc6   :  { %704 = vsyncpa [#allocation3], 1 }
  0xc7   :  { %705 = vsyncpa [#allocation6], 1 }
  0xc8   :  { %706 = vsyncpa [#allocation4], 1 }

</bundles_post_ra>
